<compile_context>
chip_gen: v5e
topology: v5e:2x2
jax: 0.10.0
libtpu: 0.0.40
codegen_flags: <defaults>
</compile_context>

<pallas_src>
import jax
import jax.numpy as jnp
from jax.experimental import pallas as pl
from jax.experimental.pallas import tpu as pltpu


def motion_predictor_kernel(x_ref, wih_ref, whh_ref, bcomb_ref, bhhn_ref,
                            wdec_ref, bdec_ref, out_ref):
    T_in, B, F = x_ref.shape          # T_in = T_enc + 1 (last slab = decoder_inputs[:, 0, :])
    T_enc = T_in - 1
    T_dec = out_ref.shape[0]
    H = whh_ref.shape[0]

    wih_t = wih_ref[...]                                      # (F, 3H)  == W_ih.T
    whh_t = whh_ref[...]                                      # (H, 3H)  == W_hh.T
    w_dec = wdec_ref[...]                                     # (H, F+3H) == [fc1.T | fc1.T @ W_ih.T]
    # Hoist bias broadcasts out of the recurrence (JAX does not CSE broadcasts in loops).
    b_comb = jnp.broadcast_to(bcomb_ref[...], (B, 3 * H))     # (b_ih+b_hh) for r,z; b_ih for n
    bhh_n = jnp.broadcast_to(bhhn_ref[...], (B, H))           # b_hh for n (stays inside r*(...))
    b_dec = jnp.broadcast_to(bdec_ref[...], (B, F + 3 * H))   # [b_fc | b_fc @ W_ih.T]

    # -------- input-side projections, hoisted off the serial recurrence chain --------
    # All are independent of h, so they pipeline through the MXU before the recurrence.
    gis = [jnp.dot(x_ref[i], wih_t, preferred_element_type=jnp.float32) + b_comb
           for i in range(T_in)]                              # each (B, 3H)

    def gru_step(gi, h):
        # Exactly ONE matmul on the serial dependency chain per recurrence step.
        gh = jnp.dot(h, whh_t, preferred_element_type=jnp.float32)          # (B, 3H)
        # TODO(synk): gate boundaries at lanes H/2H are not 128-aligned; acceptable at H=32.
        r = jax.nn.sigmoid(gi[:, 0:H] + gh[:, 0:H])
        z = jax.nn.sigmoid(gi[:, H:2 * H] + gh[:, H:2 * H])
        n = jnp.tanh(gi[:, 2 * H:] + r * (gh[:, 2 * H:] + bhh_n))
        return (1.0 - z) * n + z * h

    # ---------------- encoder warm-up (statically unrolled) ----------------
    # TODO(synk): dropout after each encoder step is identity in eval mode.
    h = jnp.zeros((B, H), dtype=jnp.float32)
    for i in range(T_enc):
        h = gru_step(gis[i], h)

    # ---------------- autoregressive decoder (statically unrolled) ----------------
    # Step 0 consumes decoder_inputs[0]; later steps feed back the previous output
    # (loop_function returns prev), matching the PyTorch code.  gi is carried so no
    # x @ W_ih matmul ever sits on the decoder's serial chain; readout + gi-update are
    # fused into a single MXU op through w_dec / b_dec.
    inp = x_ref[T_enc]                # (B, F) == decoder_inputs[:, 0, :]
    gi = gis[T_enc]
    for t in range(T_dec):
        h = gru_step(gi, h)
        proj = jnp.dot(h, w_dec, preferred_element_type=jnp.float32) + b_dec   # (B, F+3H)
        out = inp + proj[:, 0:F]                                                # residual readout
        out_ref[t] = out.astype(out_ref.dtype)
        if t + 1 < T_dec:
            gi = gi + proj[:, F:]     # == (next inp) @ W_ih.T + folded biases
            inp = out


def motion_predictor_forward(encoder_inputs, decoder_inputs, params):
    """encoder_inputs: (B, source_seq_len-1, F), decoder_inputs: (B, target_seq_len, F).
    Returns (B, target_seq_len, F), matching MotionPredictor.forward in eval mode."""
    B, T_enc, F = encoder_inputs.shape
    T_dec = decoder_inputs.shape[1]
    H = params["weight_hh"].shape[1]

    # Time-major encoder stream + decoder step-0 input, fused into one projection slab.
    enc_tm = jnp.transpose(encoder_inputs, (1, 0, 2)).astype(jnp.float32)   # (T_enc, B, F)
    dec0 = decoder_inputs[:, 0, :].astype(jnp.float32)                      # (B, F)
    x_all = jnp.concatenate([enc_tm, dec0[None]], axis=0)                   # (T_enc+1, B, F)

    wih_t = params["weight_ih"].T.astype(jnp.float32)     # (F, 3H)
    whh_t = params["weight_hh"].T.astype(jnp.float32)     # (H, 3H)
    bih = params["bias_ih"].astype(jnp.float32)           # (3H,)
    bhh = params["bias_hh"].astype(jnp.float32)           # (3H,)
    wfc_t = params["fc1_weight"].T.astype(jnp.float32)    # (H, F)
    bfc = params["fc1_bias"].astype(jnp.float32)          # (F,)

    # Pre-folded biases: r/z gates get b_ih + b_hh; n gate keeps only b_ih here
    # (b_hh_n must remain inside the r * (...) term -> passed separately).
    b_comb = jnp.concatenate([bih[:2 * H] + bhh[:2 * H], bih[2 * H:]]).reshape(1, 3 * H)
    bhh_n = bhh[2 * H:].reshape(1, H)

    # Fused decoder readout + gi-update weights/biases.
    w_dec = jnp.concatenate([wfc_t, wfc_t @ wih_t], axis=1)                 # (H, F+3H)
    b_dec = jnp.concatenate([bfc, bfc @ wih_t]).reshape(1, F + 3 * H)       # (1, F+3H)

    vmem = pl.BlockSpec(memory_space=pltpu.MemorySpace.VMEM)
    out_tm = pl.pallas_call(
        motion_predictor_kernel,
        out_shape=jax.ShapeDtypeStruct((T_dec, B, F), jnp.float32),
        in_specs=[vmem] * 7,
        out_specs=vmem,
    )(x_all, wih_t, whh_t, b_comb, bhh_n, w_dec, b_dec)

    return jnp.transpose(out_tm, (1, 0, 2))


# ---------------- pure-JAX reference (faithful PyTorch semantics, for verification) ----------------
def _reference_forward(encoder_inputs, decoder_inputs, params):
    H = params["weight_hh"].shape[1]
    wih_t = params["weight_ih"].T
    whh_t = params["weight_hh"].T
    bih = params["bias_ih"]
    bhh = params["bias_hh"]
    wfc_t = params["fc1_weight"].T
    bfc = params["fc1_bias"]

    def cell(x, h):
        gi = x @ wih_t + bih
        gh = h @ whh_t + bhh
        r = jax.nn.sigmoid(gi[:, :H] + gh[:, :H])
        z = jax.nn.sigmoid(gi[:, H:2 * H] + gh[:, H:2 * H])
        n = jnp.tanh(gi[:, 2 * H:] + r * gh[:, 2 * H:])
        return (1.0 - z) * n + z * h

    B = encoder_inputs.shape[0]
    state = jnp.zeros((B, H), jnp.float32)
    for i in range(encoder_inputs.shape[1]):
        state = cell(encoder_inputs[:, i, :], state)
    outs = []
    prev = None
    for i in range(decoder_inputs.shape[1]):
        inp = decoder_inputs[:, i, :] if prev is None else prev
        state = cell(inp, state)
        out = inp + (state @ wfc_t + bfc)
        outs.append(out)
        prev = out
    return jnp.stack(outs, axis=1)


def _init_params(key, input_size, rnn_size):
    """Deterministic init mirroring PyTorch default (uniform in +/- 1/sqrt(fan))."""
    k = jax.random.split(key, 6)
    s_gru = 1.0 / jnp.sqrt(rnn_size)
    s_fc = 1.0 / jnp.sqrt(rnn_size)
    return {
        "weight_ih": jax.random.uniform(k[0], (3 * rnn_size, input_size),
                                        jnp.float32, -s_gru, s_gru),
        "weight_hh": jax.random.uniform(k[1], (3 * rnn_size, rnn_size),
                                        jnp.float32, -s_gru, s_gru),
        "bias_ih": jax.random.uniform(k[2], (3 * rnn_size,), jnp.float32, -s_gru, s_gru),
        "bias_hh": jax.random.uniform(k[3], (3 * rnn_size,), jnp.float32, -s_gru, s_gru),
        "fc1_weight": jax.random.uniform(k[4], (input_size, rnn_size),
                                         jnp.float32, -s_fc, s_fc),
        "fc1_bias": jax.random.uniform(k[5], (input_size,), jnp.float32, -s_fc, s_fc),
    }


if __name__ == "__main__":
    # Small-but-consistent configuration.
    source_seq_len = 8
    target_seq_len = 8
    rnn_size = 32
    number_of_actions = 10
    input_size = 54 + number_of_actions   # 64
    batch_size = 2

    key = jax.random.PRNGKey(0)
    k_enc, k_dec, k_par = jax.random.split(key, 3)

    encoder_inputs = jax.random.normal(
        k_enc, (batch_size, source_seq_len - 1, input_size), jnp.float32)
    decoder_inputs = jax.random.normal(
        k_dec, (batch_size, target_seq_len, input_size), jnp.float32)
    params = _init_params(k_par, input_size, rnn_size)

    out = motion_predictor_forward(encoder_inputs, decoder_inputs, params)
    out = jax.block_until_ready(out)

    ref = _reference_forward(encoder_inputs, decoder_inputs, params)
    assert out.shape == (batch_size, target_seq_len, input_size)
    assert jnp.allclose(out, ref, atol=2e-4, rtol=2e-4), "mismatch vs JAX reference"

    print("KERNEL_OK")
</pallas_src>

<mosaic_0001>
module attributes {stable_mosaic.version = 11 : i64} {
  func.func @motion_predictor_kernel(%arg0: memref<8x2x64xf32, #tpu.memory_space<vmem>>, %arg1: memref<64x96xf32, #tpu.memory_space<vmem>>, %arg2: memref<32x96xf32, #tpu.memory_space<vmem>>, %arg3: memref<1x96xf32, #tpu.memory_space<vmem>>, %arg4: memref<1x32xf32, #tpu.memory_space<vmem>>, %arg5: memref<32x160xf32, #tpu.memory_space<vmem>>, %arg6: memref<1x160xf32, #tpu.memory_space<vmem>>, %arg7: memref<8x2x64xf32, #tpu.memory_space<vmem>>) attributes {dimension_semantics = [], scalar_prefetch = 0 : i64, scratch_operands = 0 : i64, tpu.core_type = #tpu.core_type<tc>} {
    %c0 = arith.constant 0 : index
    %c0_0 = arith.constant 0 : index
    %0 = vector.load %arg1[%c0, %c0_0] : memref<64x96xf32, #tpu.memory_space<vmem>>, vector<64x96xf32>
    %c0_1 = arith.constant 0 : index
    %c0_2 = arith.constant 0 : index
    %1 = vector.load %arg2[%c0_1, %c0_2] : memref<32x96xf32, #tpu.memory_space<vmem>>, vector<32x96xf32>
    %c0_3 = arith.constant 0 : index
    %c0_4 = arith.constant 0 : index
    %2 = vector.load %arg5[%c0_3, %c0_4] : memref<32x160xf32, #tpu.memory_space<vmem>>, vector<32x160xf32>
    %c0_5 = arith.constant 0 : index
    %c0_6 = arith.constant 0 : index
    %3 = vector.load %arg3[%c0_5, %c0_6] : memref<1x96xf32, #tpu.memory_space<vmem>>, vector<1x96xf32>
    %4 = vector.shape_cast %3 : vector<1x96xf32> to vector<1x96xf32>
    %5 = vector.broadcast %4 : vector<1x96xf32> to vector<2x96xf32>
    %c0_7 = arith.constant 0 : index
    %c0_8 = arith.constant 0 : index
    %6 = vector.load %arg4[%c0_7, %c0_8] : memref<1x32xf32, #tpu.memory_space<vmem>>, vector<1x32xf32>
    %7 = vector.shape_cast %6 : vector<1x32xf32> to vector<1x32xf32>
    %8 = vector.broadcast %7 : vector<1x32xf32> to vector<2x32xf32>
    %c0_9 = arith.constant 0 : index
    %c0_10 = arith.constant 0 : index
    %9 = vector.load %arg6[%c0_9, %c0_10] : memref<1x160xf32, #tpu.memory_space<vmem>>, vector<1x160xf32>
    %10 = vector.shape_cast %9 : vector<1x160xf32> to vector<1x160xf32>
    %11 = vector.broadcast %10 : vector<1x160xf32> to vector<2x160xf32>
    %c0_11 = arith.constant 0 : index
    %c0_12 = arith.constant 0 : index
    %c0_13 = arith.constant 0 : index
    %12 = vector.load %arg0[%c0_11, %c0_12, %c0_13] : memref<8x2x64xf32, #tpu.memory_space<vmem>>, vector<1x2x64xf32>
    %13 = vector.shape_cast %12 : vector<1x2x64xf32> to vector<2x64xf32>
    %cst = arith.constant dense<0.000000e+00> : vector<2x96xf32>
    %14 = tpu.matmul %13, %0, %cst {dimension_numbers = #tpu.dot_dimension_numbers<[1], [0], [0], [1], [0, 0, 1, 1], [], []>} : vector<2x64xf32>, vector<64x96xf32>, vector<2x96xf32> -> vector<2x96xf32>
    %15 = arith.addf %14, %5 : vector<2x96xf32>
    %c1 = arith.constant 1 : index
    %c0_14 = arith.constant 0 : index
    %c0_15 = arith.constant 0 : index
    %16 = vector.load %arg0[%c1, %c0_14, %c0_15] : memref<8x2x64xf32, #tpu.memory_space<vmem>>, vector<1x2x64xf32>
    %17 = vector.shape_cast %16 : vector<1x2x64xf32> to vector<2x64xf32>
    %cst_16 = arith.constant dense<0.000000e+00> : vector<2x96xf32>
    %18 = tpu.matmul %17, %0, %cst_16 {dimension_numbers = #tpu.dot_dimension_numbers<[1], [0], [0], [1], [0, 0, 1, 1], [], []>} : vector<2x64xf32>, vector<64x96xf32>, vector<2x96xf32> -> vector<2x96xf32>
    %19 = arith.addf %18, %5 : vector<2x96xf32>
    %c2 = arith.constant 2 : index
    %c0_17 = arith.constant 0 : index
    %c0_18 = arith.constant 0 : index
    %20 = vector.load %arg0[%c2, %c0_17, %c0_18] : memref<8x2x64xf32, #tpu.memory_space<vmem>>, vector<1x2x64xf32>
    %21 = vector.shape_cast %20 : vector<1x2x64xf32> to vector<2x64xf32>
    %cst_19 = arith.constant dense<0.000000e+00> : vector<2x96xf32>
    %22 = tpu.matmul %21, %0, %cst_19 {dimension_numbers = #tpu.dot_dimension_numbers<[1], [0], [0], [1], [0, 0, 1, 1], [], []>} : vector<2x64xf32>, vector<64x96xf32>, vector<2x96xf32> -> vector<2x96xf32>
    %23 = arith.addf %22, %5 : vector<2x96xf32>
    %c3 = arith.constant 3 : index
    %c0_20 = arith.constant 0 : index
    %c0_21 = arith.constant 0 : index
    %24 = vector.load %arg0[%c3, %c0_20, %c0_21] : memref<8x2x64xf32, #tpu.memory_space<vmem>>, vector<1x2x64xf32>
    %25 = vector.shape_cast %24 : vector<1x2x64xf32> to vector<2x64xf32>
    %cst_22 = arith.constant dense<0.000000e+00> : vector<2x96xf32>
    %26 = tpu.matmul %25, %0, %cst_22 {dimension_numbers = #tpu.dot_dimension_numbers<[1], [0], [0], [1], [0, 0, 1, 1], [], []>} : vector<2x64xf32>, vector<64x96xf32>, vector<2x96xf32> -> vector<2x96xf32>
    %27 = arith.addf %26, %5 : vector<2x96xf32>
    %c4 = arith.constant 4 : index
    %c0_23 = arith.constant 0 : index
    %c0_24 = arith.constant 0 : index
    %28 = vector.load %arg0[%c4, %c0_23, %c0_24] : memref<8x2x64xf32, #tpu.memory_space<vmem>>, vector<1x2x64xf32>
    %29 = vector.shape_cast %28 : vector<1x2x64xf32> to vector<2x64xf32>
    %cst_25 = arith.constant dense<0.000000e+00> : vector<2x96xf32>
    %30 = tpu.matmul %29, %0, %cst_25 {dimension_numbers = #tpu.dot_dimension_numbers<[1], [0], [0], [1], [0, 0, 1, 1], [], []>} : vector<2x64xf32>, vector<64x96xf32>, vector<2x96xf32> -> vector<2x96xf32>
    %31 = arith.addf %30, %5 : vector<2x96xf32>
    %c5 = arith.constant 5 : index
    %c0_26 = arith.constant 0 : index
    %c0_27 = arith.constant 0 : index
    %32 = vector.load %arg0[%c5, %c0_26, %c0_27] : memref<8x2x64xf32, #tpu.memory_space<vmem>>, vector<1x2x64xf32>
    %33 = vector.shape_cast %32 : vector<1x2x64xf32> to vector<2x64xf32>
    %cst_28 = arith.constant dense<0.000000e+00> : vector<2x96xf32>
    %34 = tpu.matmul %33, %0, %cst_28 {dimension_numbers = #tpu.dot_dimension_numbers<[1], [0], [0], [1], [0, 0, 1, 1], [], []>} : vector<2x64xf32>, vector<64x96xf32>, vector<2x96xf32> -> vector<2x96xf32>
    %35 = arith.addf %34, %5 : vector<2x96xf32>
    %c6 = arith.constant 6 : index
    %c0_29 = arith.constant 0 : index
    %c0_30 = arith.constant 0 : index
    %36 = vector.load %arg0[%c6, %c0_29, %c0_30] : memref<8x2x64xf32, #tpu.memory_space<vmem>>, vector<1x2x64xf32>
    %37 = vector.shape_cast %36 : vector<1x2x64xf32> to vector<2x64xf32>
    %cst_31 = arith.constant dense<0.000000e+00> : vector<2x96xf32>
    %38 = tpu.matmul %37, %0, %cst_31 {dimension_numbers = #tpu.dot_dimension_numbers<[1], [0], [0], [1], [0, 0, 1, 1], [], []>} : vector<2x64xf32>, vector<64x96xf32>, vector<2x96xf32> -> vector<2x96xf32>
    %39 = arith.addf %38, %5 : vector<2x96xf32>
    %c7 = arith.constant 7 : index
    %c0_32 = arith.constant 0 : index
    %c0_33 = arith.constant 0 : index
    %40 = vector.load %arg0[%c7, %c0_32, %c0_33] : memref<8x2x64xf32, #tpu.memory_space<vmem>>, vector<1x2x64xf32>
    %41 = vector.shape_cast %40 : vector<1x2x64xf32> to vector<2x64xf32>
    %cst_34 = arith.constant dense<0.000000e+00> : vector<2x96xf32>
    %42 = tpu.matmul %41, %0, %cst_34 {dimension_numbers = #tpu.dot_dimension_numbers<[1], [0], [0], [1], [0, 0, 1, 1], [], []>} : vector<2x64xf32>, vector<64x96xf32>, vector<2x96xf32> -> vector<2x96xf32>
    %43 = arith.addf %42, %5 : vector<2x96xf32>
    %cst_35 = arith.constant 0.000000e+00 : f32
    %44 = vector.broadcast %cst_35 : f32 to vector<2x32xf32>
    %cst_36 = arith.constant dense<0.000000e+00> : vector<2x96xf32>
    %45 = tpu.matmul %44, %1, %cst_36 {dimension_numbers = #tpu.dot_dimension_numbers<[1], [0], [0], [1], [0, 0, 1, 1], [], []>} : vector<2x32xf32>, vector<32x96xf32>, vector<2x96xf32> -> vector<2x96xf32>
    %46 = vector.extract_strided_slice %15 {offsets = [0, 0], sizes = [2, 32], strides = [1, 1]} : vector<2x96xf32> to vector<2x32xf32>
    %47 = vector.extract_strided_slice %45 {offsets = [0, 0], sizes = [2, 32], strides = [1, 1]} : vector<2x96xf32> to vector<2x32xf32>
    %48 = arith.addf %46, %47 : vector<2x32xf32>
    %49 = arith.negf %48 : vector<2x32xf32>
    %50 = math.exp %49 : vector<2x32xf32>
    %cst_37 = arith.constant 1.000000e+00 : f32
    %51 = vector.broadcast %cst_37 : f32 to vector<2x32xf32>
    %52 = arith.addf %51, %50 : vector<2x32xf32>
    %53 = arith.divf %51, %52 : vector<2x32xf32>
    %54 = vector.extract_strided_slice %15 {offsets = [0, 32], sizes = [2, 32], strides = [1, 1]} : vector<2x96xf32> to vector<2x32xf32>
    %55 = vector.extract_strided_slice %45 {offsets = [0, 32], sizes = [2, 32], strides = [1, 1]} : vector<2x96xf32> to vector<2x32xf32>
    %56 = arith.addf %54, %55 : vector<2x32xf32>
    %57 = arith.negf %56 : vector<2x32xf32>
    %58 = math.exp %57 : vector<2x32xf32>
    %cst_38 = arith.constant 1.000000e+00 : f32
    %59 = vector.broadcast %cst_38 : f32 to vector<2x32xf32>
    %60 = arith.addf %59, %58 : vector<2x32xf32>
    %61 = arith.divf %59, %60 : vector<2x32xf32>
    %62 = vector.extract_strided_slice %15 {offsets = [0, 64], sizes = [2, 32], strides = [1, 1]} : vector<2x96xf32> to vector<2x32xf32>
    %63 = vector.extract_strided_slice %45 {offsets = [0, 64], sizes = [2, 32], strides = [1, 1]} : vector<2x96xf32> to vector<2x32xf32>
    %64 = arith.addf %63, %8 : vector<2x32xf32>
    %65 = arith.mulf %53, %64 : vector<2x32xf32>
    %66 = arith.addf %62, %65 : vector<2x32xf32>
    %67 = math.tanh %66 : vector<2x32xf32>
    %cst_39 = arith.constant 1.000000e+00 : f32
    %68 = vector.broadcast %cst_39 : f32 to vector<2x32xf32>
    %69 = arith.subf %68, %61 : vector<2x32xf32>
    %70 = arith.mulf %69, %67 : vector<2x32xf32>
    %71 = arith.mulf %61, %44 : vector<2x32xf32>
    %72 = arith.addf %70, %71 : vector<2x32xf32>
    %cst_40 = arith.constant dense<0.000000e+00> : vector<2x96xf32>
    %73 = tpu.matmul %72, %1, %cst_40 {dimension_numbers = #tpu.dot_dimension_numbers<[1], [0], [0], [1], [0, 0, 1, 1], [], []>} : vector<2x32xf32>, vector<32x96xf32>, vector<2x96xf32> -> vector<2x96xf32>
    %74 = vector.extract_strided_slice %19 {offsets = [0, 0], sizes = [2, 32], strides = [1, 1]} : vector<2x96xf32> to vector<2x32xf32>
    %75 = vector.extract_strided_slice %73 {offsets = [0, 0], sizes = [2, 32], strides = [1, 1]} : vector<2x96xf32> to vector<2x32xf32>
    %76 = arith.addf %74, %75 : vector<2x32xf32>
    %77 = arith.negf %76 : vector<2x32xf32>
    %78 = math.exp %77 : vector<2x32xf32>
    %cst_41 = arith.constant 1.000000e+00 : f32
    %79 = vector.broadcast %cst_41 : f32 to vector<2x32xf32>
    %80 = arith.addf %79, %78 : vector<2x32xf32>
    %81 = arith.divf %79, %80 : vector<2x32xf32>
    %82 = vector.extract_strided_slice %19 {offsets = [0, 32], sizes = [2, 32], strides = [1, 1]} : vector<2x96xf32> to vector<2x32xf32>
    %83 = vector.extract_strided_slice %73 {offsets = [0, 32], sizes = [2, 32], strides = [1, 1]} : vector<2x96xf32> to vector<2x32xf32>
    %84 = arith.addf %82, %83 : vector<2x32xf32>
    %85 = arith.negf %84 : vector<2x32xf32>
    %86 = math.exp %85 : vector<2x32xf32>
    %cst_42 = arith.constant 1.000000e+00 : f32
    %87 = vector.broadcast %cst_42 : f32 to vector<2x32xf32>
    %88 = arith.addf %87, %86 : vector<2x32xf32>
    %89 = arith.divf %87, %88 : vector<2x32xf32>
    %90 = vector.extract_strided_slice %19 {offsets = [0, 64], sizes = [2, 32], strides = [1, 1]} : vector<2x96xf32> to vector<2x32xf32>
    %91 = vector.extract_strided_slice %73 {offsets = [0, 64], sizes = [2, 32], strides = [1, 1]} : vector<2x96xf32> to vector<2x32xf32>
    %92 = arith.addf %91, %8 : vector<2x32xf32>
    %93 = arith.mulf %81, %92 : vector<2x32xf32>
    %94 = arith.addf %90, %93 : vector<2x32xf32>
    %95 = math.tanh %94 : vector<2x32xf32>
    %cst_43 = arith.constant 1.000000e+00 : f32
    %96 = vector.broadcast %cst_43 : f32 to vector<2x32xf32>
    %97 = arith.subf %96, %89 : vector<2x32xf32>
    %98 = arith.mulf %97, %95 : vector<2x32xf32>
    %99 = arith.mulf %89, %72 : vector<2x32xf32>
    %100 = arith.addf %98, %99 : vector<2x32xf32>
    %cst_44 = arith.constant dense<0.000000e+00> : vector<2x96xf32>
    %101 = tpu.matmul %100, %1, %cst_44 {dimension_numbers = #tpu.dot_dimension_numbers<[1], [0], [0], [1], [0, 0, 1, 1], [], []>} : vector<2x32xf32>, vector<32x96xf32>, vector<2x96xf32> -> vector<2x96xf32>
    %102 = vector.extract_strided_slice %23 {offsets = [0, 0], sizes = [2, 32], strides = [1, 1]} : vector<2x96xf32> to vector<2x32xf32>
    %103 = vector.extract_strided_slice %101 {offsets = [0, 0], sizes = [2, 32], strides = [1, 1]} : vector<2x96xf32> to vector<2x32xf32>
    %104 = arith.addf %102, %103 : vector<2x32xf32>
    %105 = arith.negf %104 : vector<2x32xf32>
    %106 = math.exp %105 : vector<2x32xf32>
    %cst_45 = arith.constant 1.000000e+00 : f32
    %107 = vector.broadcast %cst_45 : f32 to vector<2x32xf32>
    %108 = arith.addf %107, %106 : vector<2x32xf32>
    %109 = arith.divf %107, %108 : vector<2x32xf32>
    %110 = vector.extract_strided_slice %23 {offsets = [0, 32], sizes = [2, 32], strides = [1, 1]} : vector<2x96xf32> to vector<2x32xf32>
    %111 = vector.extract_strided_slice %101 {offsets = [0, 32], sizes = [2, 32], strides = [1, 1]} : vector<2x96xf32> to vector<2x32xf32>
    %112 = arith.addf %110, %111 : vector<2x32xf32>
    %113 = arith.negf %112 : vector<2x32xf32>
    %114 = math.exp %113 : vector<2x32xf32>
    %cst_46 = arith.constant 1.000000e+00 : f32
    %115 = vector.broadcast %cst_46 : f32 to vector<2x32xf32>
    %116 = arith.addf %115, %114 : vector<2x32xf32>
    %117 = arith.divf %115, %116 : vector<2x32xf32>
    %118 = vector.extract_strided_slice %23 {offsets = [0, 64], sizes = [2, 32], strides = [1, 1]} : vector<2x96xf32> to vector<2x32xf32>
    %119 = vector.extract_strided_slice %101 {offsets = [0, 64], sizes = [2, 32], strides = [1, 1]} : vector<2x96xf32> to vector<2x32xf32>
    %120 = arith.addf %119, %8 : vector<2x32xf32>
    %121 = arith.mulf %109, %120 : vector<2x32xf32>
    %122 = arith.addf %118, %121 : vector<2x32xf32>
    %123 = math.tanh %122 : vector<2x32xf32>
    %cst_47 = arith.constant 1.000000e+00 : f32
    %124 = vector.broadcast %cst_47 : f32 to vector<2x32xf32>
    %125 = arith.subf %124, %117 : vector<2x32xf32>
    %126 = arith.mulf %125, %123 : vector<2x32xf32>
    %127 = arith.mulf %117, %100 : vector<2x32xf32>
    %128 = arith.addf %126, %127 : vector<2x32xf32>
    %cst_48 = arith.constant dense<0.000000e+00> : vector<2x96xf32>
    %129 = tpu.matmul %128, %1, %cst_48 {dimension_numbers = #tpu.dot_dimension_numbers<[1], [0], [0], [1], [0, 0, 1, 1], [], []>} : vector<2x32xf32>, vector<32x96xf32>, vector<2x96xf32> -> vector<2x96xf32>
    %130 = vector.extract_strided_slice %27 {offsets = [0, 0], sizes = [2, 32], strides = [1, 1]} : vector<2x96xf32> to vector<2x32xf32>
    %131 = vector.extract_strided_slice %129 {offsets = [0, 0], sizes = [2, 32], strides = [1, 1]} : vector<2x96xf32> to vector<2x32xf32>
    %132 = arith.addf %130, %131 : vector<2x32xf32>
    %133 = arith.negf %132 : vector<2x32xf32>
    %134 = math.exp %133 : vector<2x32xf32>
    %cst_49 = arith.constant 1.000000e+00 : f32
    %135 = vector.broadcast %cst_49 : f32 to vector<2x32xf32>
    %136 = arith.addf %135, %134 : vector<2x32xf32>
    %137 = arith.divf %135, %136 : vector<2x32xf32>
    %138 = vector.extract_strided_slice %27 {offsets = [0, 32], sizes = [2, 32], strides = [1, 1]} : vector<2x96xf32> to vector<2x32xf32>
    %139 = vector.extract_strided_slice %129 {offsets = [0, 32], sizes = [2, 32], strides = [1, 1]} : vector<2x96xf32> to vector<2x32xf32>
    %140 = arith.addf %138, %139 : vector<2x32xf32>
    %141 = arith.negf %140 : vector<2x32xf32>
    %142 = math.exp %141 : vector<2x32xf32>
    %cst_50 = arith.constant 1.000000e+00 : f32
    %143 = vector.broadcast %cst_50 : f32 to vector<2x32xf32>
    %144 = arith.addf %143, %142 : vector<2x32xf32>
    %145 = arith.divf %143, %144 : vector<2x32xf32>
    %146 = vector.extract_strided_slice %27 {offsets = [0, 64], sizes = [2, 32], strides = [1, 1]} : vector<2x96xf32> to vector<2x32xf32>
    %147 = vector.extract_strided_slice %129 {offsets = [0, 64], sizes = [2, 32], strides = [1, 1]} : vector<2x96xf32> to vector<2x32xf32>
    %148 = arith.addf %147, %8 : vector<2x32xf32>
    %149 = arith.mulf %137, %148 : vector<2x32xf32>
    %150 = arith.addf %146, %149 : vector<2x32xf32>
    %151 = math.tanh %150 : vector<2x32xf32>
    %cst_51 = arith.constant 1.000000e+00 : f32
    %152 = vector.broadcast %cst_51 : f32 to vector<2x32xf32>
    %153 = arith.subf %152, %145 : vector<2x32xf32>
    %154 = arith.mulf %153, %151 : vector<2x32xf32>
    %155 = arith.mulf %145, %128 : vector<2x32xf32>
    %156 = arith.addf %154, %155 : vector<2x32xf32>
    %cst_52 = arith.constant dense<0.000000e+00> : vector<2x96xf32>
    %157 = tpu.matmul %156, %1, %cst_52 {dimension_numbers = #tpu.dot_dimension_numbers<[1], [0], [0], [1], [0, 0, 1, 1], [], []>} : vector<2x32xf32>, vector<32x96xf32>, vector<2x96xf32> -> vector<2x96xf32>
    %158 = vector.extract_strided_slice %31 {offsets = [0, 0], sizes = [2, 32], strides = [1, 1]} : vector<2x96xf32> to vector<2x32xf32>
    %159 = vector.extract_strided_slice %157 {offsets = [0, 0], sizes = [2, 32], strides = [1, 1]} : vector<2x96xf32> to vector<2x32xf32>
    %160 = arith.addf %158, %159 : vector<2x32xf32>
    %161 = arith.negf %160 : vector<2x32xf32>
    %162 = math.exp %161 : vector<2x32xf32>
    %cst_53 = arith.constant 1.000000e+00 : f32
    %163 = vector.broadcast %cst_53 : f32 to vector<2x32xf32>
    %164 = arith.addf %163, %162 : vector<2x32xf32>
    %165 = arith.divf %163, %164 : vector<2x32xf32>
    %166 = vector.extract_strided_slice %31 {offsets = [0, 32], sizes = [2, 32], strides = [1, 1]} : vector<2x96xf32> to vector<2x32xf32>
    %167 = vector.extract_strided_slice %157 {offsets = [0, 32], sizes = [2, 32], strides = [1, 1]} : vector<2x96xf32> to vector<2x32xf32>
    %168 = arith.addf %166, %167 : vector<2x32xf32>
    %169 = arith.negf %168 : vector<2x32xf32>
    %170 = math.exp %169 : vector<2x32xf32>
    %cst_54 = arith.constant 1.000000e+00 : f32
    %171 = vector.broadcast %cst_54 : f32 to vector<2x32xf32>
    %172 = arith.addf %171, %170 : vector<2x32xf32>
    %173 = arith.divf %171, %172 : vector<2x32xf32>
    %174 = vector.extract_strided_slice %31 {offsets = [0, 64], sizes = [2, 32], strides = [1, 1]} : vector<2x96xf32> to vector<2x32xf32>
    %175 = vector.extract_strided_slice %157 {offsets = [0, 64], sizes = [2, 32], strides = [1, 1]} : vector<2x96xf32> to vector<2x32xf32>
    %176 = arith.addf %175, %8 : vector<2x32xf32>
    %177 = arith.mulf %165, %176 : vector<2x32xf32>
    %178 = arith.addf %174, %177 : vector<2x32xf32>
    %179 = math.tanh %178 : vector<2x32xf32>
    %cst_55 = arith.constant 1.000000e+00 : f32
    %180 = vector.broadcast %cst_55 : f32 to vector<2x32xf32>
    %181 = arith.subf %180, %173 : vector<2x32xf32>
    %182 = arith.mulf %181, %179 : vector<2x32xf32>
    %183 = arith.mulf %173, %156 : vector<2x32xf32>
    %184 = arith.addf %182, %183 : vector<2x32xf32>
    %cst_56 = arith.constant dense<0.000000e+00> : vector<2x96xf32>
    %185 = tpu.matmul %184, %1, %cst_56 {dimension_numbers = #tpu.dot_dimension_numbers<[1], [0], [0], [1], [0, 0, 1, 1], [], []>} : vector<2x32xf32>, vector<32x96xf32>, vector<2x96xf32> -> vector<2x96xf32>
    %186 = vector.extract_strided_slice %35 {offsets = [0, 0], sizes = [2, 32], strides = [1, 1]} : vector<2x96xf32> to vector<2x32xf32>
    %187 = vector.extract_strided_slice %185 {offsets = [0, 0], sizes = [2, 32], strides = [1, 1]} : vector<2x96xf32> to vector<2x32xf32>
    %188 = arith.addf %186, %187 : vector<2x32xf32>
    %189 = arith.negf %188 : vector<2x32xf32>
    %190 = math.exp %189 : vector<2x32xf32>
    %cst_57 = arith.constant 1.000000e+00 : f32
    %191 = vector.broadcast %cst_57 : f32 to vector<2x32xf32>
    %192 = arith.addf %191, %190 : vector<2x32xf32>
    %193 = arith.divf %191, %192 : vector<2x32xf32>
    %194 = vector.extract_strided_slice %35 {offsets = [0, 32], sizes = [2, 32], strides = [1, 1]} : vector<2x96xf32> to vector<2x32xf32>
    %195 = vector.extract_strided_slice %185 {offsets = [0, 32], sizes = [2, 32], strides = [1, 1]} : vector<2x96xf32> to vector<2x32xf32>
    %196 = arith.addf %194, %195 : vector<2x32xf32>
    %197 = arith.negf %196 : vector<2x32xf32>
    %198 = math.exp %197 : vector<2x32xf32>
    %cst_58 = arith.constant 1.000000e+00 : f32
    %199 = vector.broadcast %cst_58 : f32 to vector<2x32xf32>
    %200 = arith.addf %199, %198 : vector<2x32xf32>
    %201 = arith.divf %199, %200 : vector<2x32xf32>
    %202 = vector.extract_strided_slice %35 {offsets = [0, 64], sizes = [2, 32], strides = [1, 1]} : vector<2x96xf32> to vector<2x32xf32>
    %203 = vector.extract_strided_slice %185 {offsets = [0, 64], sizes = [2, 32], strides = [1, 1]} : vector<2x96xf32> to vector<2x32xf32>
    %204 = arith.addf %203, %8 : vector<2x32xf32>
    %205 = arith.mulf %193, %204 : vector<2x32xf32>
    %206 = arith.addf %202, %205 : vector<2x32xf32>
    %207 = math.tanh %206 : vector<2x32xf32>
    %cst_59 = arith.constant 1.000000e+00 : f32
    %208 = vector.broadcast %cst_59 : f32 to vector<2x32xf32>
    %209 = arith.subf %208, %201 : vector<2x32xf32>
    %210 = arith.mulf %209, %207 : vector<2x32xf32>
    %211 = arith.mulf %201, %184 : vector<2x32xf32>
    %212 = arith.addf %210, %211 : vector<2x32xf32>
    %cst_60 = arith.constant dense<0.000000e+00> : vector<2x96xf32>
    %213 = tpu.matmul %212, %1, %cst_60 {dimension_numbers = #tpu.dot_dimension_numbers<[1], [0], [0], [1], [0, 0, 1, 1], [], []>} : vector<2x32xf32>, vector<32x96xf32>, vector<2x96xf32> -> vector<2x96xf32>
    %214 = vector.extract_strided_slice %39 {offsets = [0, 0], sizes = [2, 32], strides = [1, 1]} : vector<2x96xf32> to vector<2x32xf32>
    %215 = vector.extract_strided_slice %213 {offsets = [0, 0], sizes = [2, 32], strides = [1, 1]} : vector<2x96xf32> to vector<2x32xf32>
    %216 = arith.addf %214, %215 : vector<2x32xf32>
    %217 = arith.negf %216 : vector<2x32xf32>
    %218 = math.exp %217 : vector<2x32xf32>
    %cst_61 = arith.constant 1.000000e+00 : f32
    %219 = vector.broadcast %cst_61 : f32 to vector<2x32xf32>
    %220 = arith.addf %219, %218 : vector<2x32xf32>
    %221 = arith.divf %219, %220 : vector<2x32xf32>
    %222 = vector.extract_strided_slice %39 {offsets = [0, 32], sizes = [2, 32], strides = [1, 1]} : vector<2x96xf32> to vector<2x32xf32>
    %223 = vector.extract_strided_slice %213 {offsets = [0, 32], sizes = [2, 32], strides = [1, 1]} : vector<2x96xf32> to vector<2x32xf32>
    %224 = arith.addf %222, %223 : vector<2x32xf32>
    %225 = arith.negf %224 : vector<2x32xf32>
    %226 = math.exp %225 : vector<2x32xf32>
    %cst_62 = arith.constant 1.000000e+00 : f32
    %227 = vector.broadcast %cst_62 : f32 to vector<2x32xf32>
    %228 = arith.addf %227, %226 : vector<2x32xf32>
    %229 = arith.divf %227, %228 : vector<2x32xf32>
    %230 = vector.extract_strided_slice %39 {offsets = [0, 64], sizes = [2, 32], strides = [1, 1]} : vector<2x96xf32> to vector<2x32xf32>
    %231 = vector.extract_strided_slice %213 {offsets = [0, 64], sizes = [2, 32], strides = [1, 1]} : vector<2x96xf32> to vector<2x32xf32>
    %232 = arith.addf %231, %8 : vector<2x32xf32>
    %233 = arith.mulf %221, %232 : vector<2x32xf32>
    %234 = arith.addf %230, %233 : vector<2x32xf32>
    %235 = math.tanh %234 : vector<2x32xf32>
    %cst_63 = arith.constant 1.000000e+00 : f32
    %236 = vector.broadcast %cst_63 : f32 to vector<2x32xf32>
    %237 = arith.subf %236, %229 : vector<2x32xf32>
    %238 = arith.mulf %237, %235 : vector<2x32xf32>
    %239 = arith.mulf %229, %212 : vector<2x32xf32>
    %240 = arith.addf %238, %239 : vector<2x32xf32>
    %c7_64 = arith.constant 7 : index
    %c0_65 = arith.constant 0 : index
    %c0_66 = arith.constant 0 : index
    %241 = vector.load %arg0[%c7_64, %c0_65, %c0_66] : memref<8x2x64xf32, #tpu.memory_space<vmem>>, vector<1x2x64xf32>
    %242 = vector.shape_cast %241 : vector<1x2x64xf32> to vector<2x64xf32>
    %cst_67 = arith.constant dense<0.000000e+00> : vector<2x96xf32>
    %243 = tpu.matmul %240, %1, %cst_67 {dimension_numbers = #tpu.dot_dimension_numbers<[1], [0], [0], [1], [0, 0, 1, 1], [], []>} : vector<2x32xf32>, vector<32x96xf32>, vector<2x96xf32> -> vector<2x96xf32>
    %244 = vector.extract_strided_slice %43 {offsets = [0, 0], sizes = [2, 32], strides = [1, 1]} : vector<2x96xf32> to vector<2x32xf32>
    %245 = vector.extract_strided_slice %243 {offsets = [0, 0], sizes = [2, 32], strides = [1, 1]} : vector<2x96xf32> to vector<2x32xf32>
    %246 = arith.addf %244, %245 : vector<2x32xf32>
    %247 = arith.negf %246 : vector<2x32xf32>
    %248 = math.exp %247 : vector<2x32xf32>
    %cst_68 = arith.constant 1.000000e+00 : f32
    %249 = vector.broadcast %cst_68 : f32 to vector<2x32xf32>
    %250 = arith.addf %249, %248 : vector<2x32xf32>
    %251 = arith.divf %249, %250 : vector<2x32xf32>
    %252 = vector.extract_strided_slice %43 {offsets = [0, 32], sizes = [2, 32], strides = [1, 1]} : vector<2x96xf32> to vector<2x32xf32>
    %253 = vector.extract_strided_slice %243 {offsets = [0, 32], sizes = [2, 32], strides = [1, 1]} : vector<2x96xf32> to vector<2x32xf32>
    %254 = arith.addf %252, %253 : vector<2x32xf32>
    %255 = arith.negf %254 : vector<2x32xf32>
    %256 = math.exp %255 : vector<2x32xf32>
    %cst_69 = arith.constant 1.000000e+00 : f32
    %257 = vector.broadcast %cst_69 : f32 to vector<2x32xf32>
    %258 = arith.addf %257, %256 : vector<2x32xf32>
    %259 = arith.divf %257, %258 : vector<2x32xf32>
    %260 = vector.extract_strided_slice %43 {offsets = [0, 64], sizes = [2, 32], strides = [1, 1]} : vector<2x96xf32> to vector<2x32xf32>
    %261 = vector.extract_strided_slice %243 {offsets = [0, 64], sizes = [2, 32], strides = [1, 1]} : vector<2x96xf32> to vector<2x32xf32>
    %262 = arith.addf %261, %8 : vector<2x32xf32>
    %263 = arith.mulf %251, %262 : vector<2x32xf32>
    %264 = arith.addf %260, %263 : vector<2x32xf32>
    %265 = math.tanh %264 : vector<2x32xf32>
    %cst_70 = arith.constant 1.000000e+00 : f32
    %266 = vector.broadcast %cst_70 : f32 to vector<2x32xf32>
    %267 = arith.subf %266, %259 : vector<2x32xf32>
    %268 = arith.mulf %267, %265 : vector<2x32xf32>
    %269 = arith.mulf %259, %240 : vector<2x32xf32>
    %270 = arith.addf %268, %269 : vector<2x32xf32>
    %cst_71 = arith.constant dense<0.000000e+00> : vector<2x160xf32>
    %271 = tpu.matmul %270, %2, %cst_71 {dimension_numbers = #tpu.dot_dimension_numbers<[1], [0], [0], [1], [0, 0, 1, 1], [], []>} : vector<2x32xf32>, vector<32x160xf32>, vector<2x160xf32> -> vector<2x160xf32>
    %272 = arith.addf %271, %11 : vector<2x160xf32>
    %273 = vector.extract_strided_slice %272 {offsets = [0, 0], sizes = [2, 64], strides = [1, 1]} : vector<2x160xf32> to vector<2x64xf32>
    %274 = arith.addf %242, %273 : vector<2x64xf32>
    %c0_72 = arith.constant 0 : index
    %c0_73 = arith.constant 0 : index
    %c0_74 = arith.constant 0 : index
    %275 = vector.load %arg7[%c0_72, %c0_73, %c0_74] : memref<8x2x64xf32, #tpu.memory_space<vmem>>, vector<1x2x64xf32>
    %276 = vector.shape_cast %275 : vector<1x2x64xf32> to vector<2x64xf32>
    %277 = vector.shape_cast %274 : vector<2x64xf32> to vector<1x2x64xf32>
    tpu.vector_store %arg7[%c0_72, %c0_73, %c0_74], %277 {strides = array<i32>} : memref<8x2x64xf32, #tpu.memory_space<vmem>>, vector<1x2x64xf32>,
    %278 = vector.extract_strided_slice %272 {offsets = [0, 64], sizes = [2, 96], strides = [1, 1]} : vector<2x160xf32> to vector<2x96xf32>
    %279 = arith.addf %43, %278 : vector<2x96xf32>
    %cst_75 = arith.constant dense<0.000000e+00> : vector<2x96xf32>
    %280 = tpu.matmul %270, %1, %cst_75 {dimension_numbers = #tpu.dot_dimension_numbers<[1], [0], [0], [1], [0, 0, 1, 1], [], []>} : vector<2x32xf32>, vector<32x96xf32>, vector<2x96xf32> -> vector<2x96xf32>
    %281 = vector.extract_strided_slice %279 {offsets = [0, 0], sizes = [2, 32], strides = [1, 1]} : vector<2x96xf32> to vector<2x32xf32>
    %282 = vector.extract_strided_slice %280 {offsets = [0, 0], sizes = [2, 32], strides = [1, 1]} : vector<2x96xf32> to vector<2x32xf32>
    %283 = arith.addf %281, %282 : vector<2x32xf32>
    %284 = arith.negf %283 : vector<2x32xf32>
    %285 = math.exp %284 : vector<2x32xf32>
    %cst_76 = arith.constant 1.000000e+00 : f32
    %286 = vector.broadcast %cst_76 : f32 to vector<2x32xf32>
    %287 = arith.addf %286, %285 : vector<2x32xf32>
    %288 = arith.divf %286, %287 : vector<2x32xf32>
    %289 = vector.extract_strided_slice %279 {offsets = [0, 32], sizes = [2, 32], strides = [1, 1]} : vector<2x96xf32> to vector<2x32xf32>
    %290 = vector.extract_strided_slice %280 {offsets = [0, 32], sizes = [2, 32], strides = [1, 1]} : vector<2x96xf32> to vector<2x32xf32>
    %291 = arith.addf %289, %290 : vector<2x32xf32>
    %292 = arith.negf %291 : vector<2x32xf32>
    %293 = math.exp %292 : vector<2x32xf32>
    %cst_77 = arith.constant 1.000000e+00 : f32
    %294 = vector.broadcast %cst_77 : f32 to vector<2x32xf32>
    %295 = arith.addf %294, %293 : vector<2x32xf32>
    %296 = arith.divf %294, %295 : vector<2x32xf32>
    %297 = vector.extract_strided_slice %279 {offsets = [0, 64], sizes = [2, 32], strides = [1, 1]} : vector<2x96xf32> to vector<2x32xf32>
    %298 = vector.extract_strided_slice %280 {offsets = [0, 64], sizes = [2, 32], strides = [1, 1]} : vector<2x96xf32> to vector<2x32xf32>
    %299 = arith.addf %298, %8 : vector<2x32xf32>
    %300 = arith.mulf %288, %299 : vector<2x32xf32>
    %301 = arith.addf %297, %300 : vector<2x32xf32>
    %302 = math.tanh %301 : vector<2x32xf32>
    %cst_78 = arith.constant 1.000000e+00 : f32
    %303 = vector.broadcast %cst_78 : f32 to vector<2x32xf32>
    %304 = arith.subf %303, %296 : vector<2x32xf32>
    %305 = arith.mulf %304, %302 : vector<2x32xf32>
    %306 = arith.mulf %296, %270 : vector<2x32xf32>
    %307 = arith.addf %305, %306 : vector<2x32xf32>
    %cst_79 = arith.constant dense<0.000000e+00> : vector<2x160xf32>
    %308 = tpu.matmul %307, %2, %cst_79 {dimension_numbers = #tpu.dot_dimension_numbers<[1], [0], [0], [1], [0, 0, 1, 1], [], []>} : vector<2x32xf32>, vector<32x160xf32>, vector<2x160xf32> -> vector<2x160xf32>
    %309 = arith.addf %308, %11 : vector<2x160xf32>
    %310 = vector.extract_strided_slice %309 {offsets = [0, 0], sizes = [2, 64], strides = [1, 1]} : vector<2x160xf32> to vector<2x64xf32>
    %311 = arith.addf %274, %310 : vector<2x64xf32>
    %c1_80 = arith.constant 1 : index
    %c0_81 = arith.constant 0 : index
    %c0_82 = arith.constant 0 : index
    %312 = vector.load %arg7[%c1_80, %c0_81, %c0_82] : memref<8x2x64xf32, #tpu.memory_space<vmem>>, vector<1x2x64xf32>
    %313 = vector.shape_cast %312 : vector<1x2x64xf32> to vector<2x64xf32>
    %314 = vector.shape_cast %311 : vector<2x64xf32> to vector<1x2x64xf32>
    tpu.vector_store %arg7[%c1_80, %c0_81, %c0_82], %314 {strides = array<i32>} : memref<8x2x64xf32, #tpu.memory_space<vmem>>, vector<1x2x64xf32>,
    %315 = vector.extract_strided_slice %309 {offsets = [0, 64], sizes = [2, 96], strides = [1, 1]} : vector<2x160xf32> to vector<2x96xf32>
    %316 = arith.addf %279, %315 : vector<2x96xf32>
    %cst_83 = arith.constant dense<0.000000e+00> : vector<2x96xf32>
    %317 = tpu.matmul %307, %1, %cst_83 {dimension_numbers = #tpu.dot_dimension_numbers<[1], [0], [0], [1], [0, 0, 1, 1], [], []>} : vector<2x32xf32>, vector<32x96xf32>, vector<2x96xf32> -> vector<2x96xf32>
    %318 = vector.extract_strided_slice %316 {offsets = [0, 0], sizes = [2, 32], strides = [1, 1]} : vector<2x96xf32> to vector<2x32xf32>
    %319 = vector.extract_strided_slice %317 {offsets = [0, 0], sizes = [2, 32], strides = [1, 1]} : vector<2x96xf32> to vector<2x32xf32>
    %320 = arith.addf %318, %319 : vector<2x32xf32>
    %321 = arith.negf %320 : vector<2x32xf32>
    %322 = math.exp %321 : vector<2x32xf32>
    %cst_84 = arith.constant 1.000000e+00 : f32
    %323 = vector.broadcast %cst_84 : f32 to vector<2x32xf32>
    %324 = arith.addf %323, %322 : vector<2x32xf32>
    %325 = arith.divf %323, %324 : vector<2x32xf32>
    %326 = vector.extract_strided_slice %316 {offsets = [0, 32], sizes = [2, 32], strides = [1, 1]} : vector<2x96xf32> to vector<2x32xf32>
    %327 = vector.extract_strided_slice %317 {offsets = [0, 32], sizes = [2, 32], strides = [1, 1]} : vector<2x96xf32> to vector<2x32xf32>
    %328 = arith.addf %326, %327 : vector<2x32xf32>
    %329 = arith.negf %328 : vector<2x32xf32>
    %330 = math.exp %329 : vector<2x32xf32>
    %cst_85 = arith.constant 1.000000e+00 : f32
    %331 = vector.broadcast %cst_85 : f32 to vector<2x32xf32>
    %332 = arith.addf %331, %330 : vector<2x32xf32>
    %333 = arith.divf %331, %332 : vector<2x32xf32>
    %334 = vector.extract_strided_slice %316 {offsets = [0, 64], sizes = [2, 32], strides = [1, 1]} : vector<2x96xf32> to vector<2x32xf32>
    %335 = vector.extract_strided_slice %317 {offsets = [0, 64], sizes = [2, 32], strides = [1, 1]} : vector<2x96xf32> to vector<2x32xf32>
    %336 = arith.addf %335, %8 : vector<2x32xf32>
    %337 = arith.mulf %325, %336 : vector<2x32xf32>
    %338 = arith.addf %334, %337 : vector<2x32xf32>
    %339 = math.tanh %338 : vector<2x32xf32>
    %cst_86 = arith.constant 1.000000e+00 : f32
    %340 = vector.broadcast %cst_86 : f32 to vector<2x32xf32>
    %341 = arith.subf %340, %333 : vector<2x32xf32>
    %342 = arith.mulf %341, %339 : vector<2x32xf32>
    %343 = arith.mulf %333, %307 : vector<2x32xf32>
    %344 = arith.addf %342, %343 : vector<2x32xf32>
    %cst_87 = arith.constant dense<0.000000e+00> : vector<2x160xf32>
    %345 = tpu.matmul %344, %2, %cst_87 {dimension_numbers = #tpu.dot_dimension_numbers<[1], [0], [0], [1], [0, 0, 1, 1], [], []>} : vector<2x32xf32>, vector<32x160xf32>, vector<2x160xf32> -> vector<2x160xf32>
    %346 = arith.addf %345, %11 : vector<2x160xf32>
    %347 = vector.extract_strided_slice %346 {offsets = [0, 0], sizes = [2, 64], strides = [1, 1]} : vector<2x160xf32> to vector<2x64xf32>
    %348 = arith.addf %311, %347 : vector<2x64xf32>
    %c2_88 = arith.constant 2 : index
    %c0_89 = arith.constant 0 : index
    %c0_90 = arith.constant 0 : index
    %349 = vector.load %arg7[%c2_88, %c0_89, %c0_90] : memref<8x2x64xf32, #tpu.memory_space<vmem>>, vector<1x2x64xf32>
    %350 = vector.shape_cast %349 : vector<1x2x64xf32> to vector<2x64xf32>
    %351 = vector.shape_cast %348 : vector<2x64xf32> to vector<1x2x64xf32>
    tpu.vector_store %arg7[%c2_88, %c0_89, %c0_90], %351 {strides = array<i32>} : memref<8x2x64xf32, #tpu.memory_space<vmem>>, vector<1x2x64xf32>,
    %352 = vector.extract_strided_slice %346 {offsets = [0, 64], sizes = [2, 96], strides = [1, 1]} : vector<2x160xf32> to vector<2x96xf32>
    %353 = arith.addf %316, %352 : vector<2x96xf32>
    %cst_91 = arith.constant dense<0.000000e+00> : vector<2x96xf32>
    %354 = tpu.matmul %344, %1, %cst_91 {dimension_numbers = #tpu.dot_dimension_numbers<[1], [0], [0], [1], [0, 0, 1, 1], [], []>} : vector<2x32xf32>, vector<32x96xf32>, vector<2x96xf32> -> vector<2x96xf32>
    %355 = vector.extract_strided_slice %353 {offsets = [0, 0], sizes = [2, 32], strides = [1, 1]} : vector<2x96xf32> to vector<2x32xf32>
    %356 = vector.extract_strided_slice %354 {offsets = [0, 0], sizes = [2, 32], strides = [1, 1]} : vector<2x96xf32> to vector<2x32xf32>
    %357 = arith.addf %355, %356 : vector<2x32xf32>
    %358 = arith.negf %357 : vector<2x32xf32>
    %359 = math.exp %358 : vector<2x32xf32>
    %cst_92 = arith.constant 1.000000e+00 : f32
    %360 = vector.broadcast %cst_92 : f32 to vector<2x32xf32>
    %361 = arith.addf %360, %359 : vector<2x32xf32>
    %362 = arith.divf %360, %361 : vector<2x32xf32>
    %363 = vector.extract_strided_slice %353 {offsets = [0, 32], sizes = [2, 32], strides = [1, 1]} : vector<2x96xf32> to vector<2x32xf32>
    %364 = vector.extract_strided_slice %354 {offsets = [0, 32], sizes = [2, 32], strides = [1, 1]} : vector<2x96xf32> to vector<2x32xf32>
    %365 = arith.addf %363, %364 : vector<2x32xf32>
    %366 = arith.negf %365 : vector<2x32xf32>
    %367 = math.exp %366 : vector<2x32xf32>
    %cst_93 = arith.constant 1.000000e+00 : f32
    %368 = vector.broadcast %cst_93 : f32 to vector<2x32xf32>
    %369 = arith.addf %368, %367 : vector<2x32xf32>
    %370 = arith.divf %368, %369 : vector<2x32xf32>
    %371 = vector.extract_strided_slice %353 {offsets = [0, 64], sizes = [2, 32], strides = [1, 1]} : vector<2x96xf32> to vector<2x32xf32>
    %372 = vector.extract_strided_slice %354 {offsets = [0, 64], sizes = [2, 32], strides = [1, 1]} : vector<2x96xf32> to vector<2x32xf32>
    %373 = arith.addf %372, %8 : vector<2x32xf32>
    %374 = arith.mulf %362, %373 : vector<2x32xf32>
    %375 = arith.addf %371, %374 : vector<2x32xf32>
    %376 = math.tanh %375 : vector<2x32xf32>
    %cst_94 = arith.constant 1.000000e+00 : f32
    %377 = vector.broadcast %cst_94 : f32 to vector<2x32xf32>
    %378 = arith.subf %377, %370 : vector<2x32xf32>
    %379 = arith.mulf %378, %376 : vector<2x32xf32>
    %380 = arith.mulf %370, %344 : vector<2x32xf32>
    %381 = arith.addf %379, %380 : vector<2x32xf32>
    %cst_95 = arith.constant dense<0.000000e+00> : vector<2x160xf32>
    %382 = tpu.matmul %381, %2, %cst_95 {dimension_numbers = #tpu.dot_dimension_numbers<[1], [0], [0], [1], [0, 0, 1, 1], [], []>} : vector<2x32xf32>, vector<32x160xf32>, vector<2x160xf32> -> vector<2x160xf32>
    %383 = arith.addf %382, %11 : vector<2x160xf32>
    %384 = vector.extract_strided_slice %383 {offsets = [0, 0], sizes = [2, 64], strides = [1, 1]} : vector<2x160xf32> to vector<2x64xf32>
    %385 = arith.addf %348, %384 : vector<2x64xf32>
    %c3_96 = arith.constant 3 : index
    %c0_97 = arith.constant 0 : index
    %c0_98 = arith.constant 0 : index
    %386 = vector.load %arg7[%c3_96, %c0_97, %c0_98] : memref<8x2x64xf32, #tpu.memory_space<vmem>>, vector<1x2x64xf32>
    %387 = vector.shape_cast %386 : vector<1x2x64xf32> to vector<2x64xf32>
    %388 = vector.shape_cast %385 : vector<2x64xf32> to vector<1x2x64xf32>
    tpu.vector_store %arg7[%c3_96, %c0_97, %c0_98], %388 {strides = array<i32>} : memref<8x2x64xf32, #tpu.memory_space<vmem>>, vector<1x2x64xf32>,
    %389 = vector.extract_strided_slice %383 {offsets = [0, 64], sizes = [2, 96], strides = [1, 1]} : vector<2x160xf32> to vector<2x96xf32>
    %390 = arith.addf %353, %389 : vector<2x96xf32>
    %cst_99 = arith.constant dense<0.000000e+00> : vector<2x96xf32>
    %391 = tpu.matmul %381, %1, %cst_99 {dimension_numbers = #tpu.dot_dimension_numbers<[1], [0], [0], [1], [0, 0, 1, 1], [], []>} : vector<2x32xf32>, vector<32x96xf32>, vector<2x96xf32> -> vector<2x96xf32>
    %392 = vector.extract_strided_slice %390 {offsets = [0, 0], sizes = [2, 32], strides = [1, 1]} : vector<2x96xf32> to vector<2x32xf32>
    %393 = vector.extract_strided_slice %391 {offsets = [0, 0], sizes = [2, 32], strides = [1, 1]} : vector<2x96xf32> to vector<2x32xf32>
    %394 = arith.addf %392, %393 : vector<2x32xf32>
    %395 = arith.negf %394 : vector<2x32xf32>
    %396 = math.exp %395 : vector<2x32xf32>
    %cst_100 = arith.constant 1.000000e+00 : f32
    %397 = vector.broadcast %cst_100 : f32 to vector<2x32xf32>
    %398 = arith.addf %397, %396 : vector<2x32xf32>
    %399 = arith.divf %397, %398 : vector<2x32xf32>
    %400 = vector.extract_strided_slice %390 {offsets = [0, 32], sizes = [2, 32], strides = [1, 1]} : vector<2x96xf32> to vector<2x32xf32>
    %401 = vector.extract_strided_slice %391 {offsets = [0, 32], sizes = [2, 32], strides = [1, 1]} : vector<2x96xf32> to vector<2x32xf32>
    %402 = arith.addf %400, %401 : vector<2x32xf32>
    %403 = arith.negf %402 : vector<2x32xf32>
    %404 = math.exp %403 : vector<2x32xf32>
    %cst_101 = arith.constant 1.000000e+00 : f32
    %405 = vector.broadcast %cst_101 : f32 to vector<2x32xf32>
    %406 = arith.addf %405, %404 : vector<2x32xf32>
    %407 = arith.divf %405, %406 : vector<2x32xf32>
    %408 = vector.extract_strided_slice %390 {offsets = [0, 64], sizes = [2, 32], strides = [1, 1]} : vector<2x96xf32> to vector<2x32xf32>
    %409 = vector.extract_strided_slice %391 {offsets = [0, 64], sizes = [2, 32], strides = [1, 1]} : vector<2x96xf32> to vector<2x32xf32>
    %410 = arith.addf %409, %8 : vector<2x32xf32>
    %411 = arith.mulf %399, %410 : vector<2x32xf32>
    %412 = arith.addf %408, %411 : vector<2x32xf32>
    %413 = math.tanh %412 : vector<2x32xf32>
    %cst_102 = arith.constant 1.000000e+00 : f32
    %414 = vector.broadcast %cst_102 : f32 to vector<2x32xf32>
    %415 = arith.subf %414, %407 : vector<2x32xf32>
    %416 = arith.mulf %415, %413 : vector<2x32xf32>
    %417 = arith.mulf %407, %381 : vector<2x32xf32>
    %418 = arith.addf %416, %417 : vector<2x32xf32>
    %cst_103 = arith.constant dense<0.000000e+00> : vector<2x160xf32>
    %419 = tpu.matmul %418, %2, %cst_103 {dimension_numbers = #tpu.dot_dimension_numbers<[1], [0], [0], [1], [0, 0, 1, 1], [], []>} : vector<2x32xf32>, vector<32x160xf32>, vector<2x160xf32> -> vector<2x160xf32>
    %420 = arith.addf %419, %11 : vector<2x160xf32>
    %421 = vector.extract_strided_slice %420 {offsets = [0, 0], sizes = [2, 64], strides = [1, 1]} : vector<2x160xf32> to vector<2x64xf32>
    %422 = arith.addf %385, %421 : vector<2x64xf32>
    %c4_104 = arith.constant 4 : index
    %c0_105 = arith.constant 0 : index
    %c0_106 = arith.constant 0 : index
    %423 = vector.load %arg7[%c4_104, %c0_105, %c0_106] : memref<8x2x64xf32, #tpu.memory_space<vmem>>, vector<1x2x64xf32>
    %424 = vector.shape_cast %423 : vector<1x2x64xf32> to vector<2x64xf32>
    %425 = vector.shape_cast %422 : vector<2x64xf32> to vector<1x2x64xf32>
    tpu.vector_store %arg7[%c4_104, %c0_105, %c0_106], %425 {strides = array<i32>} : memref<8x2x64xf32, #tpu.memory_space<vmem>>, vector<1x2x64xf32>,
    %426 = vector.extract_strided_slice %420 {offsets = [0, 64], sizes = [2, 96], strides = [1, 1]} : vector<2x160xf32> to vector<2x96xf32>
    %427 = arith.addf %390, %426 : vector<2x96xf32>
    %cst_107 = arith.constant dense<0.000000e+00> : vector<2x96xf32>
    %428 = tpu.matmul %418, %1, %cst_107 {dimension_numbers = #tpu.dot_dimension_numbers<[1], [0], [0], [1], [0, 0, 1, 1], [], []>} : vector<2x32xf32>, vector<32x96xf32>, vector<2x96xf32> -> vector<2x96xf32>
    %429 = vector.extract_strided_slice %427 {offsets = [0, 0], sizes = [2, 32], strides = [1, 1]} : vector<2x96xf32> to vector<2x32xf32>
    %430 = vector.extract_strided_slice %428 {offsets = [0, 0], sizes = [2, 32], strides = [1, 1]} : vector<2x96xf32> to vector<2x32xf32>
    %431 = arith.addf %429, %430 : vector<2x32xf32>
    %432 = arith.negf %431 : vector<2x32xf32>
    %433 = math.exp %432 : vector<2x32xf32>
    %cst_108 = arith.constant 1.000000e+00 : f32
    %434 = vector.broadcast %cst_108 : f32 to vector<2x32xf32>
    %435 = arith.addf %434, %433 : vector<2x32xf32>
    %436 = arith.divf %434, %435 : vector<2x32xf32>
    %437 = vector.extract_strided_slice %427 {offsets = [0, 32], sizes = [2, 32], strides = [1, 1]} : vector<2x96xf32> to vector<2x32xf32>
    %438 = vector.extract_strided_slice %428 {offsets = [0, 32], sizes = [2, 32], strides = [1, 1]} : vector<2x96xf32> to vector<2x32xf32>
    %439 = arith.addf %437, %438 : vector<2x32xf32>
    %440 = arith.negf %439 : vector<2x32xf32>
    %441 = math.exp %440 : vector<2x32xf32>
    %cst_109 = arith.constant 1.000000e+00 : f32
    %442 = vector.broadcast %cst_109 : f32 to vector<2x32xf32>
    %443 = arith.addf %442, %441 : vector<2x32xf32>
    %444 = arith.divf %442, %443 : vector<2x32xf32>
    %445 = vector.extract_strided_slice %427 {offsets = [0, 64], sizes = [2, 32], strides = [1, 1]} : vector<2x96xf32> to vector<2x32xf32>
    %446 = vector.extract_strided_slice %428 {offsets = [0, 64], sizes = [2, 32], strides = [1, 1]} : vector<2x96xf32> to vector<2x32xf32>
    %447 = arith.addf %446, %8 : vector<2x32xf32>
    %448 = arith.mulf %436, %447 : vector<2x32xf32>
    %449 = arith.addf %445, %448 : vector<2x32xf32>
    %450 = math.tanh %449 : vector<2x32xf32>
    %cst_110 = arith.constant 1.000000e+00 : f32
    %451 = vector.broadcast %cst_110 : f32 to vector<2x32xf32>
    %452 = arith.subf %451, %444 : vector<2x32xf32>
    %453 = arith.mulf %452, %450 : vector<2x32xf32>
    %454 = arith.mulf %444, %418 : vector<2x32xf32>
    %455 = arith.addf %453, %454 : vector<2x32xf32>
    %cst_111 = arith.constant dense<0.000000e+00> : vector<2x160xf32>
    %456 = tpu.matmul %455, %2, %cst_111 {dimension_numbers = #tpu.dot_dimension_numbers<[1], [0], [0], [1], [0, 0, 1, 1], [], []>} : vector<2x32xf32>, vector<32x160xf32>, vector<2x160xf32> -> vector<2x160xf32>
    %457 = arith.addf %456, %11 : vector<2x160xf32>
    %458 = vector.extract_strided_slice %457 {offsets = [0, 0], sizes = [2, 64], strides = [1, 1]} : vector<2x160xf32> to vector<2x64xf32>
    %459 = arith.addf %422, %458 : vector<2x64xf32>
    %c5_112 = arith.constant 5 : index
    %c0_113 = arith.constant 0 : index
    %c0_114 = arith.constant 0 : index
    %460 = vector.load %arg7[%c5_112, %c0_113, %c0_114] : memref<8x2x64xf32, #tpu.memory_space<vmem>>, vector<1x2x64xf32>
    %461 = vector.shape_cast %460 : vector<1x2x64xf32> to vector<2x64xf32>
    %462 = vector.shape_cast %459 : vector<2x64xf32> to vector<1x2x64xf32>
    tpu.vector_store %arg7[%c5_112, %c0_113, %c0_114], %462 {strides = array<i32>} : memref<8x2x64xf32, #tpu.memory_space<vmem>>, vector<1x2x64xf32>,
    %463 = vector.extract_strided_slice %457 {offsets = [0, 64], sizes = [2, 96], strides = [1, 1]} : vector<2x160xf32> to vector<2x96xf32>
    %464 = arith.addf %427, %463 : vector<2x96xf32>
    %cst_115 = arith.constant dense<0.000000e+00> : vector<2x96xf32>
    %465 = tpu.matmul %455, %1, %cst_115 {dimension_numbers = #tpu.dot_dimension_numbers<[1], [0], [0], [1], [0, 0, 1, 1], [], []>} : vector<2x32xf32>, vector<32x96xf32>, vector<2x96xf32> -> vector<2x96xf32>
    %466 = vector.extract_strided_slice %464 {offsets = [0, 0], sizes = [2, 32], strides = [1, 1]} : vector<2x96xf32> to vector<2x32xf32>
    %467 = vector.extract_strided_slice %465 {offsets = [0, 0], sizes = [2, 32], strides = [1, 1]} : vector<2x96xf32> to vector<2x32xf32>
    %468 = arith.addf %466, %467 : vector<2x32xf32>
    %469 = arith.negf %468 : vector<2x32xf32>
    %470 = math.exp %469 : vector<2x32xf32>
    %cst_116 = arith.constant 1.000000e+00 : f32
    %471 = vector.broadcast %cst_116 : f32 to vector<2x32xf32>
    %472 = arith.addf %471, %470 : vector<2x32xf32>
    %473 = arith.divf %471, %472 : vector<2x32xf32>
    %474 = vector.extract_strided_slice %464 {offsets = [0, 32], sizes = [2, 32], strides = [1, 1]} : vector<2x96xf32> to vector<2x32xf32>
    %475 = vector.extract_strided_slice %465 {offsets = [0, 32], sizes = [2, 32], strides = [1, 1]} : vector<2x96xf32> to vector<2x32xf32>
    %476 = arith.addf %474, %475 : vector<2x32xf32>
    %477 = arith.negf %476 : vector<2x32xf32>
    %478 = math.exp %477 : vector<2x32xf32>
    %cst_117 = arith.constant 1.000000e+00 : f32
    %479 = vector.broadcast %cst_117 : f32 to vector<2x32xf32>
    %480 = arith.addf %479, %478 : vector<2x32xf32>
    %481 = arith.divf %479, %480 : vector<2x32xf32>
    %482 = vector.extract_strided_slice %464 {offsets = [0, 64], sizes = [2, 32], strides = [1, 1]} : vector<2x96xf32> to vector<2x32xf32>
    %483 = vector.extract_strided_slice %465 {offsets = [0, 64], sizes = [2, 32], strides = [1, 1]} : vector<2x96xf32> to vector<2x32xf32>
    %484 = arith.addf %483, %8 : vector<2x32xf32>
    %485 = arith.mulf %473, %484 : vector<2x32xf32>
    %486 = arith.addf %482, %485 : vector<2x32xf32>
    %487 = math.tanh %486 : vector<2x32xf32>
    %cst_118 = arith.constant 1.000000e+00 : f32
    %488 = vector.broadcast %cst_118 : f32 to vector<2x32xf32>
    %489 = arith.subf %488, %481 : vector<2x32xf32>
    %490 = arith.mulf %489, %487 : vector<2x32xf32>
    %491 = arith.mulf %481, %455 : vector<2x32xf32>
    %492 = arith.addf %490, %491 : vector<2x32xf32>
    %cst_119 = arith.constant dense<0.000000e+00> : vector<2x160xf32>
    %493 = tpu.matmul %492, %2, %cst_119 {dimension_numbers = #tpu.dot_dimension_numbers<[1], [0], [0], [1], [0, 0, 1, 1], [], []>} : vector<2x32xf32>, vector<32x160xf32>, vector<2x160xf32> -> vector<2x160xf32>
    %494 = arith.addf %493, %11 : vector<2x160xf32>
    %495 = vector.extract_strided_slice %494 {offsets = [0, 0], sizes = [2, 64], strides = [1, 1]} : vector<2x160xf32> to vector<2x64xf32>
    %496 = arith.addf %459, %495 : vector<2x64xf32>
    %c6_120 = arith.constant 6 : index
    %c0_121 = arith.constant 0 : index
    %c0_122 = arith.constant 0 : index
    %497 = vector.load %arg7[%c6_120, %c0_121, %c0_122] : memref<8x2x64xf32, #tpu.memory_space<vmem>>, vector<1x2x64xf32>
    %498 = vector.shape_cast %497 : vector<1x2x64xf32> to vector<2x64xf32>
    %499 = vector.shape_cast %496 : vector<2x64xf32> to vector<1x2x64xf32>
    tpu.vector_store %arg7[%c6_120, %c0_121, %c0_122], %499 {strides = array<i32>} : memref<8x2x64xf32, #tpu.memory_space<vmem>>, vector<1x2x64xf32>,
    %500 = vector.extract_strided_slice %494 {offsets = [0, 64], sizes = [2, 96], strides = [1, 1]} : vector<2x160xf32> to vector<2x96xf32>
    %501 = arith.addf %464, %500 : vector<2x96xf32>
    %cst_123 = arith.constant dense<0.000000e+00> : vector<2x96xf32>
    %502 = tpu.matmul %492, %1, %cst_123 {dimension_numbers = #tpu.dot_dimension_numbers<[1], [0], [0], [1], [0, 0, 1, 1], [], []>} : vector<2x32xf32>, vector<32x96xf32>, vector<2x96xf32> -> vector<2x96xf32>
    %503 = vector.extract_strided_slice %501 {offsets = [0, 0], sizes = [2, 32], strides = [1, 1]} : vector<2x96xf32> to vector<2x32xf32>
    %504 = vector.extract_strided_slice %502 {offsets = [0, 0], sizes = [2, 32], strides = [1, 1]} : vector<2x96xf32> to vector<2x32xf32>
    %505 = arith.addf %503, %504 : vector<2x32xf32>
    %506 = arith.negf %505 : vector<2x32xf32>
    %507 = math.exp %506 : vector<2x32xf32>
    %cst_124 = arith.constant 1.000000e+00 : f32
    %508 = vector.broadcast %cst_124 : f32 to vector<2x32xf32>
    %509 = arith.addf %508, %507 : vector<2x32xf32>
    %510 = arith.divf %508, %509 : vector<2x32xf32>
    %511 = vector.extract_strided_slice %501 {offsets = [0, 32], sizes = [2, 32], strides = [1, 1]} : vector<2x96xf32> to vector<2x32xf32>
    %512 = vector.extract_strided_slice %502 {offsets = [0, 32], sizes = [2, 32], strides = [1, 1]} : vector<2x96xf32> to vector<2x32xf32>
    %513 = arith.addf %511, %512 : vector<2x32xf32>
    %514 = arith.negf %513 : vector<2x32xf32>
    %515 = math.exp %514 : vector<2x32xf32>
    %cst_125 = arith.constant 1.000000e+00 : f32
    %516 = vector.broadcast %cst_125 : f32 to vector<2x32xf32>
    %517 = arith.addf %516, %515 : vector<2x32xf32>
    %518 = arith.divf %516, %517 : vector<2x32xf32>
    %519 = vector.extract_strided_slice %501 {offsets = [0, 64], sizes = [2, 32], strides = [1, 1]} : vector<2x96xf32> to vector<2x32xf32>
    %520 = vector.extract_strided_slice %502 {offsets = [0, 64], sizes = [2, 32], strides = [1, 1]} : vector<2x96xf32> to vector<2x32xf32>
    %521 = arith.addf %520, %8 : vector<2x32xf32>
    %522 = arith.mulf %510, %521 : vector<2x32xf32>
    %523 = arith.addf %519, %522 : vector<2x32xf32>
    %524 = math.tanh %523 : vector<2x32xf32>
    %cst_126 = arith.constant 1.000000e+00 : f32
    %525 = vector.broadcast %cst_126 : f32 to vector<2x32xf32>
    %526 = arith.subf %525, %518 : vector<2x32xf32>
    %527 = arith.mulf %526, %524 : vector<2x32xf32>
    %528 = arith.mulf %518, %492 : vector<2x32xf32>
    %529 = arith.addf %527, %528 : vector<2x32xf32>
    %cst_127 = arith.constant dense<0.000000e+00> : vector<2x160xf32>
    %530 = tpu.matmul %529, %2, %cst_127 {dimension_numbers = #tpu.dot_dimension_numbers<[1], [0], [0], [1], [0, 0, 1, 1], [], []>} : vector<2x32xf32>, vector<32x160xf32>, vector<2x160xf32> -> vector<2x160xf32>
    %531 = arith.addf %530, %11 : vector<2x160xf32>
    %532 = vector.extract_strided_slice %531 {offsets = [0, 0], sizes = [2, 64], strides = [1, 1]} : vector<2x160xf32> to vector<2x64xf32>
    %533 = arith.addf %496, %532 : vector<2x64xf32>
    %c7_128 = arith.constant 7 : index
    %c0_129 = arith.constant 0 : index
    %c0_130 = arith.constant 0 : index
    %534 = vector.load %arg7[%c7_128, %c0_129, %c0_130] : memref<8x2x64xf32, #tpu.memory_space<vmem>>, vector<1x2x64xf32>
    %535 = vector.shape_cast %534 : vector<1x2x64xf32> to vector<2x64xf32>
    %536 = vector.shape_cast %533 : vector<2x64xf32> to vector<1x2x64xf32>
    tpu.vector_store %arg7[%c7_128, %c0_129, %c0_130], %536 {strides = array<i32>} : memref<8x2x64xf32, #tpu.memory_space<vmem>>, vector<1x2x64xf32>,
    return
  }
}

</mosaic_0001>

<bundles_post_ra>
// kernel: tpu_custom_call.1
= control target key start
LH: loop header
LB: loop body
LE: loop exit
PB: predicated region body
PF: predicated region fallthrough
CT: control target
= control target key end

     0   :  { %12 = vsyncpa [#allocation3], 0  ;;  %s2519_s0 = inlined_call_operand.hbm [shape: f32[8,2,64], index: 0, kind: input, shape index: {}]   ;;  %s2520_s1 = inlined_call_operand.hbm [shape: f32[64,96], index: 1, kind: input, shape index: {}]   ;;  %s2521_s2 = inlined_call_operand.hbm [shape: f32[32,96], index: 2, kind: input, shape index: {}]   ;;  %s2522_s3 = inlined_call_operand.vmem [shape: f32[1,96], index: 3, kind: input, shape index: {}]   ;;  %s2523_s4 = inlined_call_operand.hbm [shape: f32[1,32], index: 4, kind: input, shape index: {}]   ;;  %s2524_s5 = inlined_call_operand.hbm [shape: f32[32,160], index: 5, kind: input, shape index: {}]   ;;  %s2525_s6 = inlined_call_operand.vmem [shape: f32[1,160], index: 6, kind: input, shape index: {}]   ;;  %s2526_s7 = inlined_call_operand.hbm [shape: f32[8,2,64], index: 7, kind: output, shape index: {}]  }
   0x1   :  { %13 = vsyncpa [#allocation6], 0 }
   0x2   :  { %14 = vsyncpa [#allocation9], 0  ;;  %s33_s26 = sshll.u32 %s2520_s1, 4  ;;  %s34_s26 = int_to_ptr.hbm [resolvable:$true] %s33_s26 }
   0x3   :  { %15 = vsyncpa [#allocation4], 0  ;;  %s2041_s27 = smov [#allocation5]   ;;  %s62_s8 = sshll.u32 %s2523_s4, 4  ;;  %s63_s8 = int_to_ptr.hbm [resolvable:$true] %s62_s8 }
   0x4   :  { %s35_s28 = sshll.u32 %s2041_s27, 4  ;;  %s2042_s9 = smov 128   ;;  %s36_s28 = int_to_ptr.vmem [resolvable:$true] %s35_s28 }
   0x5   :  { %s2043_s10 = smov 8   ;;  %s2044_s11 = smov [#allocation8]  }
   0x6   :  { %41 = dma.hbm_to_vmem [thread:$0]  %s34_s26, 1024, %s36_s28, [#allocation6], %s2042_s9, %s2042_s9, %s2043_s10  }
   0x7   :  { %s64_s12 = sshll.u32 %s2044_s11, 4  ;;  %s20_s15 = sshll.u32 %s2519_s0, 4  ;;  %s65_s12 = int_to_ptr.vmem [resolvable:$true] %s64_s12  ;;  %s21_s15 = int_to_ptr.hbm [resolvable:$true] %s20_s15 }
   0x8   :  { %67 = dma.hbm_to_vmem [thread:$0]  %s63_s8, 16, %s65_s12, [#allocation9]  }
   0x9   :  { %s2045_s1 = smov [#allocation2]   ;;  %s46_s4 = sshll.u32 %s2521_s2, 4  ;;  %s47_s4 = int_to_ptr.hbm [resolvable:$true] %s46_s4 }
   0xa   :  { %s22_s16 = sshll.u32 %s2045_s1, 4  ;;  %s2046_s19 = smov 32   ;;  %s23_s16 = int_to_ptr.vmem [resolvable:$true] %s22_s16 }
   0xb   :  { %s2047_s20 = smov 2   ;;  %s2048_s21 = smov [#allocation7]  }
   0xc   :  { %28 = dma.hbm_to_vmem [thread:$0]  %s21_s15, 256, %s23_s16, [#allocation3], %s2046_s19, %s2046_s19, %s2047_s20  }
   0xd   :  { %s48_s22 = sshll.u32 %s2048_s21, 4  ;;  %s72_s24 = sshll.u32 %s2524_s5, 4  ;;  %s49_s22 = int_to_ptr.vmem [resolvable:$true] %s48_s22  ;;  %s73_s24 = int_to_ptr.hbm [resolvable:$true] %s72_s24 }
   0xe   :  { %54 = dma.hbm_to_vmem [thread:$0]  %s47_s4, 512, %s49_s22, [#allocation6], %s2042_s9, %s2042_s9, %s2043_s10  }
   0xf   :  { %s2049_s25 = smov [#allocation10]   ;;  %s2050_s2 = smov 256  }
  0x10   :  { %s74_s26 = sshll.u32 %s2049_s25, 4  ;;  %s2051_s27 = smov 16   ;;  %s75_s26 = int_to_ptr.vmem [resolvable:$true] %s74_s26 }
  0x11   :  { %80 = dma.hbm_to_vmem [thread:$0]  %s73_s24, 1024, %s75_s26, [#allocation9], %s2050_s2, %s2050_s2, %s2051_s27  }
  0x12   :  { %2033 = dma.done.wait [#allocation3], 256  }
  0x13   :  { %2034 = vsyncadd [#allocation3], 4294967040 }
  0x14   :  { %2035 = dma.done.wait [#allocation6], 1536  }
  0x15   :  { %2036 = vsyncadd [#allocation6], 4294965760 }
  0x16   :  { %2037 = dma.done.wait [#allocation9], 1040  }
  0x17   :  { %2038 = vsyncadd [#allocation9], 4294966256  ;;  %v110_v0 = vld [vmem:[#allocation5 + $0x38] sm:$0xff]  ;;  %v109_v1 = vld [vmem:[#allocation5 + $0x30] sm:$0xff]  ;;  %s2052_s5 = smov 64   ;;  %vm137_vm0 = vcmask 523264  }
  0x18   :  { %149 = vmatpush.msra.mxu0 %v110_v0  ;;  %174 = vmatpush.msra.mxu1 %v110_v0  ;;  %v108_v2 = vld [vmem:[#allocation5 + $0x28] sm:$0xff]  ;;  %v107_v3 = vld [vmem:[#allocation5 + $0x20] sm:$0xff]  ;;  %v106_v4 = vld [vmem:[#allocation5 + $0x18] sm:$0xff]  ;;  %v2053_v15 = vmov 0.0   ;;  %vm336_vm5 = vcmask 261120   ;;  %s1711_s12 = sshll.u32 %s2526_s7, 4  ;;  %s1712_s12 = int_to_ptr.hbm [resolvable:$true] %s1711_s12 }
  0x19   :  { %199 = vmatpush.msra.mxu2 %v110_v0  ;;  %224 = vmatpush.msra.mxu3 %v110_v0  ;;  %v1793_v5 = vld [vmem:[#allocation8] ss:$0 sm:$0xff]  ;;  %v105_v6 = vld [vmem:[#allocation5 + $0x10] sm:$0xff]  ;;  %v104_v7 = vld [vmem:[#allocation5 + $0x8] sm:$0xff] }
  0x1a   :  { %150 = vmatpush.msra.mxu0 %v109_v1  ;;  %175 = vmatpush.msra.mxu1 %v109_v1  ;;  %v103_v8 = vld [vmem:[#allocation5] sm:$0xff]  ;;  %v136_v9 = vld [vmem:[#allocation2] sm:$0x3]  ;;  %v237_v10 = vld [vmem:[#allocation2 + $0x8] sm:$0x3] }
  0x1b   :  { %200 = vmatpush.msra.mxu2 %v109_v1  ;;  %225 = vmatpush.msra.mxu3 %v109_v1  ;;  %v2116_v11 = vld [vmem:[#allocation7 + $0x18] sm:$0xff]  ;;  %v2119_v12 = vld [vmem:[#allocation7 + $0x10] sm:$0xff]  ;;  %v2122_v13 = vld [vmem:[#allocation7 + $0x8] sm:$0xff] }
  0x1c   :  { %151 = vmatpush.msra.mxu0 %v108_v2  ;;  %176 = vmatpush.msra.mxu1 %v108_v2  ;;  %v2125_v14 = vld [vmem:[#allocation7] sm:$0xff]  ;;  %v2142_v21 = vld [vmem:[%s2522_s3] ss:$0 sm:$0xff]  ;;  %s2054_s3 = smov 96   ;;  %v162_v42 = vld [vmem:[#allocation2 + $0x2] sm:$0x3] }
  0x1d   :  { %201 = vmatpush.msra.mxu2 %v108_v2  ;;  %226 = vmatpush.msra.mxu3 %v108_v2  ;;  %v262_v43 = vld [vmem:[#allocation2 + $0xa] sm:$0x3] }
  0x1e   :  { %152 = vmatpush.msra.mxu0 %v107_v3  ;;  %177 = vmatpush.msra.mxu1 %v107_v3 }
  0x1f   :  { %202 = vmatpush.msra.mxu2 %v107_v3  ;;  %227 = vmatpush.msra.mxu3 %v107_v3 }
  0x20   :  { %153 = vmatpush.msra.mxu0 %v106_v4  ;;  %380 = vrot.lane.b32.xlu0 %v1793_v5, %s2052_s5 }
  0x21   :  { %178 = vmatpush.msra.mxu1 %v106_v4  ;;  %203 = vmatpush.msra.mxu2 %v106_v4 }
  0x22   :  { %154 = vmatpush.msra.mxu0 %v105_v6  ;;  %228 = vmatpush.msra.mxu3 %v106_v4 }
  0x23   :  { %179 = vmatpush.msra.mxu1 %v105_v6  ;;  %204 = vmatpush.msra.mxu2 %v105_v6 }
  0x24   :  { %155 = vmatpush.msra.mxu0 %v104_v7  ;;  %229 = vmatpush.msra.mxu3 %v105_v6 }
  0x25   :  { %180 = vmatpush.msra.mxu1 %v104_v7  ;;  %205 = vmatpush.msra.mxu2 %v104_v7 }
  0x26   :  { %156 = vmatpush.msra.mxu0 %v103_v8  ;;  %230 = vmatpush.msra.mxu3 %v104_v7 }
  0x27   :  { %181 = vmatpush.msra.mxu1 %v103_v8  ;;  %1726 = vmatmul.msk.f32.vlgmr.msra.gmra.mxu0 %vm137_vm0, %v136_v9 }
  0x28   :  { %249 = vmatpush.msrb.mxu0 %v110_v0  ;;  %206 = vmatpush.msra.mxu2 %v103_v8 }
  0x29   :  { %274 = vmatpush.msrb.mxu1 %v110_v0  ;;  %231 = vmatpush.msra.mxu3 %v103_v8 }
  0x2a   :  { %250 = vmatpush.msrb.mxu0 %v109_v1  ;;  %299 = vmatpush.msrb.mxu2 %v110_v0 }
  0x2b   :  { %275 = vmatpush.msrb.mxu1 %v109_v1  ;;  %324 = vmatpush.msrb.mxu3 %v110_v0 }
  0x2c   :  { %251 = vmatpush.msrb.mxu0 %v108_v2  ;;  %300 = vmatpush.msrb.mxu2 %v109_v1 }
  0x2d   :  { %276 = vmatpush.msrb.mxu1 %v108_v2  ;;  %325 = vmatpush.msrb.mxu3 %v109_v1 }
  0x2e   :  { %252 = vmatpush.msrb.mxu0 %v107_v3  ;;  %301 = vmatpush.msrb.mxu2 %v108_v2 }
  0x2f   :  { %277 = vmatpush.msrb.mxu1 %v107_v3  ;;  %326 = vmatpush.msrb.mxu3 %v108_v2 }
  0x30   :  { %253 = vmatpush.msrb.mxu0 %v106_v4  ;;  %302 = vmatpush.msrb.mxu2 %v107_v3 }
  0x31   :  { %278 = vmatpush.msrb.mxu1 %v106_v4  ;;  %327 = vmatpush.msrb.mxu3 %v107_v3 }
  0x32   :  { %254 = vmatpush.msrb.mxu0 %v105_v6  ;;  %303 = vmatpush.msrb.mxu2 %v106_v4 }
  0x33   :  { %279 = vmatpush.msrb.mxu1 %v105_v6  ;;  %328 = vmatpush.msrb.mxu3 %v106_v4 }
  0x34   :  { %255 = vmatpush.msrb.mxu0 %v104_v7  ;;  %304 = vmatpush.msrb.mxu2 %v105_v6 }
  0x35   :  { %280 = vmatpush.msrb.mxu1 %v104_v7  ;;  %329 = vmatpush.msrb.mxu3 %v105_v6 }
  0x36   :  { %256 = vmatpush.msrb.mxu0 %v103_v8  ;;  %305 = vmatpush.msrb.mxu2 %v104_v7 }
  0x37   :  { %1730 = vmatmul.msk.f32.vlgmr.msrb.gmra.mxu0 %vm137_vm0, %v237_v10  ;;  %281 = vmatpush.msrb.mxu1 %v103_v8  ;;  %v187_v10 = vld [vmem:[#allocation2 + $0x4] sm:$0x3] }
  0x38   :  { %352 = vmatpush.msra.mxu0 %v2116_v11  ;;  %306 = vmatpush.msrb.mxu2 %v103_v8 }
  0x39   :  { %330 = vmatpush.msrb.mxu3 %v104_v7  ;;  %1727 = vmatmul.msk.f32.vlgmr.msra.gmra.mxu1 %vm137_vm0, %v162_v42 }
  0x3a   :  { %353 = vmatpush.msra.mxu0 %v2119_v12  ;;  %420 = vmatpush.msra.mxu1 %v2116_v11 }
  0x3b   :  { %331 = vmatpush.msrb.mxu3 %v103_v8  ;;  %1728 = vmatmul.msk.f32.vlgmr.msra.gmra.mxu2 %vm137_vm0, %v187_v10 }
  0x3c   :  { %354 = vmatpush.msra.mxu0 %v2122_v13  ;;  %421 = vmatpush.msra.mxu1 %v2119_v12 }
  0x3d   :  { %485 = vmatpush.msra.mxu2 %v2116_v11 }
  0x3e   :  { %355 = vmatpush.msra.mxu0 %v2125_v14  ;;  %422 = vmatpush.msra.mxu1 %v2122_v13 }
  0x3f   :  { %356 = vmatmul.f32.vlgmr.msra.gmra.mxu0 %v2053_v15  ;;  %486 = vmatpush.msra.mxu2 %v2119_v12  ;;  %v287_v15 = vld [vmem:[#allocation2 + $0xc] sm:$0x3] }
  0x40   :  { %615 = vmatpush.msrb.mxu0 %v2116_v11  ;;  %423 = vmatpush.msra.mxu1 %v2125_v14 }
  0x41   :  { %1731 = vmatmul.msk.f32.vlgmr.msrb.gmra.mxu1 %vm137_vm0, %v262_v43  ;;  %487 = vmatpush.msra.mxu2 %v2122_v13 }
  0x42   :  { %616 = vmatpush.msrb.mxu0 %v2119_v12  ;;  %680 = vmatpush.msrb.mxu1 %v2116_v11 }
  0x43   :  { %488 = vmatpush.msra.mxu2 %v2125_v14 }
  0x44   :  { %617 = vmatpush.msrb.mxu0 %v2122_v13  ;;  %681 = vmatpush.msrb.mxu1 %v2119_v12 }
  0x45   :  { %1732 = vmatmul.msk.f32.vlgmr.msrb.gmra.mxu2 %vm137_vm0, %v287_v15 }
  0x46   :  { %618 = vmatpush.msrb.mxu0 %v2125_v14  ;;  %682 = vmatpush.msrb.mxu1 %v2122_v13 }
  0x47   :  { %745 = vmatpush.msrb.mxu2 %v2116_v11 }
  0x48   :  { %683 = vmatpush.msrb.mxu1 %v2125_v14 }
  0x49   :  { %746 = vmatpush.msrb.mxu2 %v2119_v12 }
  0x4b   :  { %747 = vmatpush.msrb.mxu2 %v2122_v13 }
  0x4d   :  { %748 = vmatpush.msrb.mxu2 %v2125_v14 }
  0x92   :  { %v2135_v18 = vpop.permute.xlu0 %380 }
  0xa4   :  { %v158_v16 = vpop.f32.mrf.mxu0 }
  0xa5   :  { %v159_v22 = vadd.f32 %v2142_v21, %v158_v16 }
  0xb4   :  { %v2133_v17 = vpop.f32.mrf.mxu0 }
  0xb6   :  { %v183_v50 = vpop.f32.mrf.mxu1 }
  0xb7   :  { %v184_v54 = vadd.f32 %v2142_v21, %v183_v50  ;;  %v2192_v50 = vld [vmem:[#allocation2 + $0xe] sm:$0x3] }
  0xbc   :  { %v357_v19 = vpop.f32.mrf.mxu0 }
  0xbd   :  { %v383_v20 = vadd.f32 %v2135_v18, %v357_v19  ;;  %v360_v23 = vadd.f32 %v357_v19, %v159_v22 }
  0xbe   :  { %v2159_v51 = vpop.f32.mrf.mxu1 }
  0xbf   :  { %385 = vrot.lane.b32.xlu0 %v383_v20, %s2052_s5  ;;  %v1734_v24 = vmul.f32 -1.442695, %v360_v23 }
  0xc1   :  { %1795 = vpow2.f32 %v1734_v24 }
  0xc7   :  { %v1796_v25 = vpop.eup %1795 }
  0xc8   :  { %v364_v26 = vadd.f32 1.0, %v1796_v25  ;;  %v208_v25 = vpop.f32.mrf.mxu2 }
  0xca   :  { %1797 = vrcp.f32 %v364_v26  ;;  %v376_v32 = vand.u32 2147483648, %v364_v26  ;;  %vm370_vm2 = vweird.f32 %v364_v26  ;;  %v374_v33 = vand.u32 2147483647, %v364_v26 }
  0xcc   :  { %v377_v35 = vor.u32 1.1754944e-38, %v376_v32  ;;  %vm375_vm4 = vcmp.eq.f32.partialorder %v374_v33, 8.507059e+37 }
  0xd0   :  { %v1798_v27 = vpop.eup %1797 }
  0xd1   :  { %v366_v28 = vmul.f32 %v1798_v27, %v364_v26  ;;  %vm371_vm1 = vweird.f32 %v1798_v27  ;;  %v2182_v26 = vpop.f32.mrf.mxu2 }
  0xd2   :  { %vm372_vm3 = vmor %vm370_vm2, %vm371_vm1 }
  0xd3   :  { %v367_v29 = vsub.f32 1.0, %v366_v28 }
  0xd5   :  { %v368_v30 = vmul.f32 %v1798_v27, %v367_v29  ;;  %v209_v29 = vadd.f32 %v2142_v21, %v208_v25 }
  0xd7   :  { %v369_v31 = vadd.f32 %v1798_v27, %v368_v30 }
  0xd9   :  { %v373_v34 = vsel %vm372_vm3, %v1798_v27, %v369_v31 }
  0xda   :  { %v378_v37 = vsel %vm375_vm4, %v377_v35, %v373_v34 }
  0xdb   :  { %v395_v44 = vsub.f32 1.0, %v378_v37  ;;  %v401_v47 = vmul.f32 0.0, %v378_v37 }
 0x131   :  { %v386_v36 = vpop.permute.xlu0 %385 }
 0x132   :  { %v388_v38 = vmul.f32 %v386_v36, %v378_v37 }
 0x134   :  { %390 = vrot.lane.b32.xlu1 %v388_v38, %s2052_s5 }
 0x1a6   :  { %v391_v39 = vpop.permute.xlu1 %390 }
 0x1a7   :  { %v393_v40 = vadd.f32 %v391_v39, %v159_v22 }
 0x1a9   :  { %1799 = vtanh.f32 %v393_v40 }
 0x1af   :  { %v1800_v41 = vpop.eup %1799 }
 0x1b0   :  { %397 = vrot.lane.b32.xlu1 %v1800_v41, %s2054_s3 }
 0x222   :  { %v398_v45 = vpop.permute.xlu1 %397 }
 0x223   :  { %v400_v46 = vmul.f32 %v398_v45, %v395_v44 }
 0x225   :  { %v402_v48 = vadd.f32 %v401_v47, %v400_v46 }
 0x227   :  { %404 = vrot.lane.b32.xlu2 %v402_v48, %s2054_s3 }
 0x281   :  { %v405_v49 = vpop.permute.xlu2 %404 }
 0x282   :  { %1735 = vmatmul.msk.f32.vlgmr.msra.gmra.mxu1 %vm336_vm5, %v405_v49  ;;  %v212_v49 = vld [vmem:[#allocation2 + $0x6] sm:$0x3] }
 0x283   :  { %1729 = vmatmul.msk.f32.vlgmr.msra.gmra.mxu3 %vm137_vm0, %v212_v49 }
 0x284   :  { %550 = vmatpush.msra.mxu3 %v2116_v11 }
 0x286   :  { %551 = vmatpush.msra.mxu3 %v2119_v12 }
 0x288   :  { %552 = vmatpush.msra.mxu3 %v2122_v13 }
 0x28a   :  { %553 = vmatpush.msra.mxu3 %v2125_v14 }
 0x28b   :  { %1733 = vmatmul.msk.f32.vlgmr.msrb.gmra.mxu3 %vm137_vm0, %v2192_v50 }
 0x28c   :  { %810 = vmatpush.msrb.mxu3 %v2116_v11 }
 0x28e   :  { %811 = vmatpush.msrb.mxu3 %v2119_v12 }
 0x290   :  { %812 = vmatpush.msrb.mxu3 %v2122_v13 }
 0x292   :  { %813 = vmatpush.msrb.mxu3 %v2125_v14 }
 0x2ff   :  { %v425_v52 = vpop.f32.mrf.mxu1 }
 0x300   :  { %v448_v53 = vadd.f32 %v425_v52, %v2135_v18  ;;  %v428_v55 = vadd.f32 %v425_v52, %v184_v54 }
 0x302   :  { %450 = vrot.lane.b32.xlu2 %v448_v53, %s2052_s5  ;;  %v1736_v56 = vmul.f32 -1.442695, %v428_v55 }
 0x304   :  { %1801 = vpow2.f32 %v1736_v56 }
 0x30a   :  { %v1802_v57 = vpop.eup %1801 }
 0x30b   :  { %v432_v58 = vadd.f32 1.0, %v1802_v57 }
 0x30d   :  { %1803 = vrcp.f32 %v432_v58  ;;  %v444_v0 = vand.u32 2147483648, %v432_v58  ;;  %vm438_vm7 = vweird.f32 %v432_v58  ;;  %v442_v1 = vand.u32 2147483647, %v432_v58 }
 0x30f   :  { %v445_v3 = vor.u32 1.1754944e-38, %v444_v0  ;;  %vm443_vm9 = vcmp.eq.f32.partialorder %v442_v1, 8.507059e+37 }
 0x313   :  { %v1804_v59 = vpop.eup %1803 }
 0x314   :  { %v434_v60 = vmul.f32 %v1804_v59, %v432_v58  ;;  %vm439_vm6 = vweird.f32 %v1804_v59  ;;  %v233_v58 = vpop.f32.mrf.mxu3 }
 0x315   :  { %vm440_vm8 = vmor %vm438_vm7, %vm439_vm6 }
 0x316   :  { %v435_v61 = vsub.f32 1.0, %v434_v60 }
 0x318   :  { %v436_v62 = vmul.f32 %v1804_v59, %v435_v61 }
 0x31a   :  { %v437_v63 = vadd.f32 %v1804_v59, %v436_v62  ;;  %v234_v62 = vadd.f32 %v2142_v21, %v233_v58 }
 0x31c   :  { %v441_v2 = vsel %vm440_vm8, %v1804_v59, %v437_v63  ;;  %v2204_v59 = vpop.f32.mrf.mxu3 }
 0x31d   :  { %v446_v5 = vsel %vm443_vm9, %v445_v3, %v441_v2 }
 0x31e   :  { %v460_v16 = vsub.f32 1.0, %v446_v5  ;;  %v466_v20 = vmul.f32 %v446_v5, %v402_v48 }
 0x35c   :  { %v451_v4 = vpop.permute.xlu2 %450 }
 0x35d   :  { %v453_v6 = vmul.f32 %v451_v4, %v446_v5 }
 0x35f   :  { %455 = vrot.lane.b32.xlu0 %v453_v6, %s2052_s5 }
 0x3d1   :  { %v456_v7 = vpop.permute.xlu0 %455 }
 0x3d2   :  { %v458_v8 = vadd.f32 %v456_v7, %v184_v54 }
 0x3d4   :  { %1805 = vtanh.f32 %v458_v8 }
 0x3da   :  { %v1806_v9 = vpop.eup %1805 }
 0x3db   :  { %462 = vrot.lane.b32.xlu1 %v1806_v9, %s2054_s3 }
 0x44d   :  { %v463_v19 = vpop.permute.xlu1 %462 }
 0x44e   :  { %v465_v22 = vmul.f32 %v463_v19, %v460_v16 }
 0x450   :  { %v467_v23 = vadd.f32 %v466_v20, %v465_v22 }
 0x452   :  { %469 = vrot.lane.b32.xlu2 %v467_v23, %s2054_s3 }
 0x4ac   :  { %v470_v24 = vpop.permute.xlu2 %469 }
 0x4ad   :  { %1737 = vmatmul.msk.f32.vlgmr.msra.gmra.mxu2 %vm336_vm5, %v470_v24 }
 0x4ae   :  { %927 = vmatpush.msra.mxu2 %v2116_v11 }
 0x4b0   :  { %928 = vmatpush.msra.mxu2 %v2119_v12 }
 0x4b2   :  { %929 = vmatpush.msra.mxu2 %v2122_v13 }
 0x4b4   :  { %930 = vmatpush.msra.mxu2 %v2125_v14 }
 0x530   :  { %v490_v27 = vpop.f32.mrf.mxu2 }
 0x531   :  { %v513_v28 = vadd.f32 %v490_v27, %v2135_v18  ;;  %v493_v30 = vadd.f32 %v490_v27, %v209_v29 }
 0x533   :  { %515 = vrot.lane.b32.xlu0 %v513_v28, %s2052_s5  ;;  %v1738_v31 = vmul.f32 -1.442695, %v493_v30 }
 0x535   :  { %1807 = vpow2.f32 %v1738_v31 }
 0x53b   :  { %v1808_v32 = vpop.eup %1807 }
 0x53c   :  { %v497_v33 = vadd.f32 1.0, %v1808_v32 }
 0x53e   :  { %1809 = vrcp.f32 %v497_v33  ;;  %v509_v39 = vand.u32 2147483648, %v497_v33  ;;  %vm503_vm11 = vweird.f32 %v497_v33  ;;  %v507_v40 = vand.u32 2147483647, %v497_v33 }
 0x540   :  { %v510_v42 = vor.u32 1.1754944e-38, %v509_v39  ;;  %vm508_vm13 = vcmp.eq.f32.partialorder %v507_v40, 8.507059e+37 }
 0x544   :  { %v1810_v34 = vpop.eup %1809 }
 0x545   :  { %v499_v35 = vmul.f32 %v1810_v34, %v497_v33  ;;  %vm504_vm10 = vweird.f32 %v1810_v34 }
 0x546   :  { %vm505_vm12 = vmor %vm503_vm11, %vm504_vm10 }
 0x547   :  { %v500_v36 = vsub.f32 1.0, %v499_v35 }
 0x549   :  { %v501_v37 = vmul.f32 %v1810_v34, %v500_v36 }
 0x54b   :  { %v502_v38 = vadd.f32 %v1810_v34, %v501_v37 }
 0x54d   :  { %v506_v41 = vsel %vm505_vm12, %v1810_v34, %v502_v38  ;;  %v259_v34 = vadd.f32 %v2142_v21, %v2133_v17 }
 0x54e   :  { %v511_v44 = vsel %vm508_vm13, %v510_v42, %v506_v41 }
 0x54f   :  { %v525_v52 = vsub.f32 1.0, %v511_v44  ;;  %v531_v54 = vmul.f32 %v511_v44, %v467_v23 }
 0x5a5   :  { %v516_v43 = vpop.permute.xlu0 %515 }
 0x5a6   :  { %v518_v45 = vmul.f32 %v516_v43, %v511_v44 }
 0x5a8   :  { %520 = vrot.lane.b32.xlu1 %v518_v45, %s2052_s5 }
 0x61a   :  { %v521_v46 = vpop.permute.xlu1 %520 }
 0x61b   :  { %v523_v47 = vadd.f32 %v521_v46, %v209_v29 }
 0x61d   :  { %1811 = vtanh.f32 %v523_v47 }
 0x623   :  { %v1812_v48 = vpop.eup %1811 }
 0x624   :  { %527 = vrot.lane.b32.xlu2 %v1812_v48, %s2054_s3 }
 0x67e   :  { %v528_v53 = vpop.permute.xlu2 %527 }
 0x67f   :  { %v530_v55 = vmul.f32 %v528_v53, %v525_v52 }
 0x681   :  { %v532_v56 = vadd.f32 %v531_v54, %v530_v55 }
 0x683   :  { %534 = vrot.lane.b32.xlu0 %v532_v56, %s2054_s3 }
 0x6f5   :  { %v535_v57 = vpop.permute.xlu0 %534 }
 0x6f6   :  { %1739 = vmatmul.msk.f32.vlgmr.msra.gmra.mxu3 %vm336_vm5, %v535_v57 }
 0x779   :  { %v555_v60 = vpop.f32.mrf.mxu3 }
 0x77a   :  { %v578_v61 = vadd.f32 %v555_v60, %v2135_v18  ;;  %v558_v63 = vadd.f32 %v555_v60, %v234_v62 }
 0x77c   :  { %580 = vrot.lane.b32.xlu1 %v578_v61, %s2052_s5  ;;  %v1740_v0 = vmul.f32 -1.442695, %v558_v63 }
 0x77e   :  { %1813 = vpow2.f32 %v1740_v0  ;;  %v284_v0 = vadd.f32 %v2142_v21, %v2159_v51 }
 0x784   :  { %v1814_v1 = vpop.eup %1813 }
 0x785   :  { %v562_v2 = vadd.f32 1.0, %v1814_v1 }
 0x787   :  { %1815 = vrcp.f32 %v562_v2  ;;  %v574_v8 = vand.u32 2147483648, %v562_v2  ;;  %vm568_vm15 = vweird.f32 %v562_v2  ;;  %v572_v9 = vand.u32 2147483647, %v562_v2 }
 0x789   :  { %v575_v15 = vor.u32 1.1754944e-38, %v574_v8  ;;  %vm573_vm2 = vcmp.eq.f32.partialorder %v572_v9, 8.507059e+37 }
 0x78d   :  { %v1816_v3 = vpop.eup %1815 }
 0x78e   :  { %v564_v4 = vmul.f32 %v1816_v3, %v562_v2  ;;  %vm569_vm14 = vweird.f32 %v1816_v3 }
 0x78f   :  { %vm570_vm1 = vmor %vm568_vm15, %vm569_vm14 }
 0x790   :  { %v565_v5 = vsub.f32 1.0, %v564_v4 }
 0x792   :  { %v566_v6 = vmul.f32 %v1816_v3, %v565_v5 }
 0x794   :  { %v567_v7 = vadd.f32 %v1816_v3, %v566_v6 }
 0x796   :  { %v571_v10 = vsel %vm570_vm1, %v1816_v3, %v567_v7 }
 0x797   :  { %v576_v19 = vsel %vm573_vm2, %v575_v15, %v571_v10 }
 0x798   :  { %v590_v25 = vsub.f32 1.0, %v576_v19  ;;  %v596_v28 = vmul.f32 %v576_v19, %v532_v56 }
 0x7ee   :  { %v581_v16 = vpop.permute.xlu1 %580 }
 0x7ef   :  { %v583_v20 = vmul.f32 %v581_v16, %v576_v19 }
 0x7f1   :  { %585 = vrot.lane.b32.xlu2 %v583_v20, %s2052_s5 }
 0x84b   :  { %v586_v22 = vpop.permute.xlu2 %585 }
 0x84c   :  { %v588_v23 = vadd.f32 %v586_v22, %v234_v62 }
 0x84e   :  { %1817 = vtanh.f32 %v588_v23 }
 0x854   :  { %v1818_v24 = vpop.eup %1817 }
 0x855   :  { %592 = vrot.lane.b32.xlu0 %v1818_v24, %s2054_s3 }
 0x8c7   :  { %v593_v27 = vpop.permute.xlu0 %592 }
 0x8c8   :  { %v595_v29 = vmul.f32 %v593_v27, %v590_v25 }
 0x8ca   :  { %v597_v30 = vadd.f32 %v596_v28, %v595_v29 }
 0x8cc   :  { %599 = vrot.lane.b32.xlu1 %v597_v30, %s2054_s3 }
 0x93e   :  { %v600_v31 = vpop.permute.xlu1 %599 }
 0x93f   :  { %1741 = vmatmul.msk.f32.vlgmr.msrb.gmra.mxu0 %vm336_vm5, %v600_v31 }
 0x9bc   :  { %v620_v32 = vpop.f32.mrf.mxu0 }
 0x9bd   :  { %v643_v33 = vadd.f32 %v620_v32, %v2135_v18  ;;  %v623_v35 = vadd.f32 %v620_v32, %v259_v34 }
 0x9bf   :  { %645 = vrot.lane.b32.xlu2 %v643_v33, %s2052_s5  ;;  %v1742_v36 = vmul.f32 -1.442695, %v623_v35  ;;  %v309_v35 = vadd.f32 %v2142_v21, %v2182_v26 }
 0x9c1   :  { %1819 = vpow2.f32 %v1742_v36 }
 0x9c7   :  { %v1820_v37 = vpop.eup %1819 }
 0x9c8   :  { %v627_v38 = vadd.f32 1.0, %v1820_v37 }
 0x9ca   :  { %1821 = vrcp.f32 %v627_v38  ;;  %v639_v44 = vand.u32 2147483648, %v627_v38  ;;  %vm633_vm4 = vweird.f32 %v627_v38  ;;  %v637_v45 = vand.u32 2147483647, %v627_v38 }
 0x9cc   :  { %v640_v47 = vor.u32 1.1754944e-38, %v639_v44  ;;  %vm638_vm7 = vcmp.eq.f32.partialorder %v637_v45, 8.507059e+37 }
 0x9d0   :  { %v1822_v39 = vpop.eup %1821 }
 0x9d1   :  { %v629_v40 = vmul.f32 %v1822_v39, %v627_v38  ;;  %vm634_vm3 = vweird.f32 %v1822_v39 }
 0x9d2   :  { %vm635_vm6 = vmor %vm633_vm4, %vm634_vm3 }
 0x9d3   :  { %v630_v41 = vsub.f32 1.0, %v629_v40 }
 0x9d5   :  { %v631_v42 = vmul.f32 %v1822_v39, %v630_v41 }
 0x9d7   :  { %v632_v43 = vadd.f32 %v1822_v39, %v631_v42 }
 0x9d9   :  { %v636_v46 = vsel %vm635_vm6, %v1822_v39, %v632_v43  ;;  %vm904_vm6 = vcmask 517120  }
 0x9da   :  { %v641_v48 = vsel %vm638_vm7, %v640_v47, %v636_v46 }
 0x9db   :  { %v655_v55 = vsub.f32 1.0, %v641_v48  ;;  %v661_v57 = vmul.f32 %v641_v48, %v597_v30 }
 0xa19   :  { %v646_v17 = vpop.permute.xlu2 %645 }
 0xa1a   :  { %v648_v49 = vmul.f32 %v646_v17, %v641_v48 }
 0xa1c   :  { %650 = vrot.lane.b32.xlu0 %v648_v49, %s2052_s5 }
 0xa8e   :  { %v651_v52 = vpop.permute.xlu0 %650 }
 0xa8f   :  { %v653_v53 = vadd.f32 %v651_v52, %v259_v34 }
 0xa91   :  { %1823 = vtanh.f32 %v653_v53 }
 0xa97   :  { %v1824_v54 = vpop.eup %1823 }
 0xa98   :  { %657 = vrot.lane.b32.xlu1 %v1824_v54, %s2054_s3 }
 0xb0a   :  { %v658_v56 = vpop.permute.xlu1 %657 }
 0xb0b   :  { %v660_v58 = vmul.f32 %v658_v56, %v655_v55 }
 0xb0d   :  { %v662_v60 = vadd.f32 %v661_v57, %v660_v58 }
 0xb0f   :  { %664 = vrot.lane.b32.xlu2 %v662_v60, %s2054_s3 }
 0xb69   :  { %v665_v61 = vpop.permute.xlu2 %664 }
 0xb6a   :  { %1743 = vmatmul.msk.f32.vlgmr.msrb.gmra.mxu1 %vm336_vm5, %v665_v61 }
 0xbe7   :  { %v685_v62 = vpop.f32.mrf.mxu1 }
 0xbe8   :  { %v708_v63 = vadd.f32 %v685_v62, %v2135_v18  ;;  %v688_v1 = vadd.f32 %v685_v62, %v284_v0 }
 0xbea   :  { %710 = vrot.lane.b32.xlu0 %v708_v63, %s2052_s5  ;;  %v1744_v2 = vmul.f32 -1.442695, %v688_v1 }
 0xbec   :  { %1825 = vpow2.f32 %v1744_v2 }
 0xbf2   :  { %v1826_v3 = vpop.eup %1825 }
 0xbf3   :  { %v692_v4 = vadd.f32 1.0, %v1826_v3 }
 0xbf5   :  { %1827 = vrcp.f32 %v692_v4  ;;  %v704_v10 = vand.u32 2147483648, %v692_v4  ;;  %vm698_vm9 = vweird.f32 %v692_v4  ;;  %v702_v15 = vand.u32 2147483647, %v692_v4 }
 0xbf7   :  { %v705_v19 = vor.u32 1.1754944e-38, %v704_v10  ;;  %vm703_vm11 = vcmp.eq.f32.partialorder %v702_v15, 8.507059e+37 }
 0xbfb   :  { %v1828_v5 = vpop.eup %1827 }
 0xbfc   :  { %v694_v6 = vmul.f32 %v1828_v5, %v692_v4  ;;  %vm699_vm8 = vweird.f32 %v1828_v5 }
 0xbfd   :  { %vm700_vm10 = vmor %vm698_vm9, %vm699_vm8 }
 0xbfe   :  { %v695_v7 = vsub.f32 1.0, %v694_v6 }
 0xc00   :  { %v696_v8 = vmul.f32 %v1828_v5, %v695_v7 }
 0xc02   :  { %v697_v9 = vadd.f32 %v1828_v5, %v696_v8 }
 0xc04   :  { %v701_v16 = vsel %vm700_vm10, %v1828_v5, %v697_v9 }
 0xc05   :  { %v706_v20 = vsel %vm703_vm11, %v705_v19, %v701_v16 }
 0xc06   :  { %v720_v27 = vsub.f32 1.0, %v706_v20  ;;  %v726_v29 = vmul.f32 %v706_v20, %v662_v60 }
 0xc5c   :  { %v711_v51 = vpop.permute.xlu0 %710 }
 0xc5d   :  { %v713_v22 = vmul.f32 %v711_v51, %v706_v20 }
 0xc5f   :  { %715 = vrot.lane.b32.xlu1 %v713_v22, %s2052_s5 }
 0xcd1   :  { %v716_v23 = vpop.permute.xlu1 %715 }
 0xcd2   :  { %v718_v24 = vadd.f32 %v716_v23, %v284_v0  ;;  %v2244_v0 = vadd.f32 %v2142_v21, %v2204_v59 }
 0xcd4   :  { %1829 = vtanh.f32 %v718_v24  ;;  %v2250_v24 = vld [vmem:[#allocation10 + $0x30] sm:$0xff] }
 0xcd5   :  { %875 = vmatpush.msra.mxu0 %v2250_v24  ;;  %992 = vmatpush.msra.mxu3 %v2250_v24 }
 0xcda   :  { %v1830_v25 = vpop.eup %1829 }
 0xcdb   :  { %722 = vrot.lane.b32.xlu2 %v1830_v25, %s2054_s3  ;;  %v2252_v25 = vld [vmem:[#allocation10 + $0x38] sm:$0xff] }
 0xcdc   :  { %895 = vmatpush.msra.mxu1 %v2252_v25 }
 0xd35   :  { %v723_v28 = vpop.permute.xlu2 %722 }
 0xd36   :  { %v725_v30 = vmul.f32 %v723_v28, %v720_v27  ;;  %v2254_v27 = vld [vmem:[#allocation10 + $0x20] sm:$0xff]  ;;  %v2258_v28 = vld [vmem:[#allocation10 + $0x28] sm:$0xff] }
 0xd37   :  { %876 = vmatpush.msra.mxu0 %v2254_v27  ;;  %896 = vmatpush.msra.mxu1 %v2258_v28 }
 0xd38   :  { %v727_v31 = vadd.f32 %v726_v29, %v725_v30  ;;  %v2260_v29 = vld [vmem:[#allocation10 + $0x10] sm:$0xff]  ;;  %v2262_v30 = vld [vmem:[#allocation10 + $0x18] sm:$0xff]  ;;  %993 = vmatpush.msra.mxu3 %v2254_v27 }
 0xd39   :  { %877 = vmatpush.msra.mxu0 %v2260_v29  ;;  %897 = vmatpush.msra.mxu1 %v2262_v30 }
 0xd3a   :  { %729 = vrot.lane.b32.xlu0 %v727_v31, %s2054_s3  ;;  %994 = vmatpush.msra.mxu3 %v2260_v29 }
 0xdac   :  { %v730_v32 = vpop.permute.xlu0 %729 }
 0xdad   :  { %1745 = vmatmul.msk.f32.vlgmr.msrb.gmra.mxu2 %vm336_vm5, %v730_v32  ;;  %v2270_v32 = vld [vmem:[#allocation10 + $0x8] sm:$0xff] }
 0xdae   :  { %1109 = vmatpush.msrb.mxu2 %v2250_v24  ;;  %898 = vmatpush.msra.mxu1 %v2270_v32 }
 0xdb0   :  { %1110 = vmatpush.msrb.mxu2 %v2254_v27  ;;  %1044 = vmatpush.msrb.mxu1 %v2116_v11 }
 0xdb2   :  { %1111 = vmatpush.msrb.mxu2 %v2260_v29  ;;  %1045 = vmatpush.msrb.mxu1 %v2119_v12 }
 0xdb4   :  { %1046 = vmatpush.msrb.mxu1 %v2122_v13 }
 0xdb6   :  { %1047 = vmatpush.msrb.mxu1 %v2125_v14 }
 0xe30   :  { %v750_v33 = vpop.f32.mrf.mxu2 }
 0xe31   :  { %v773_v34 = vadd.f32 %v750_v33, %v2135_v18  ;;  %v753_v36 = vadd.f32 %v750_v33, %v309_v35 }
 0xe33   :  { %775 = vrot.lane.b32.xlu1 %v773_v34, %s2052_s5  ;;  %v1746_v37 = vmul.f32 -1.442695, %v753_v36 }
 0xe35   :  { %1831 = vpow2.f32 %v1746_v37 }
 0xe3b   :  { %v1832_v38 = vpop.eup %1831 }
 0xe3c   :  { %v757_v39 = vadd.f32 1.0, %v1832_v38 }
 0xe3e   :  { %1833 = vrcp.f32 %v757_v39  ;;  %v769_v45 = vand.u32 2147483648, %v757_v39  ;;  %vm763_vm13 = vweird.f32 %v757_v39  ;;  %v767_v46 = vand.u32 2147483647, %v757_v39 }
 0xe40   :  { %v770_v17 = vor.u32 1.1754944e-38, %v769_v45  ;;  %vm768_vm15 = vcmp.eq.f32.partialorder %v767_v46, 8.507059e+37 }
 0xe44   :  { %v1834_v40 = vpop.eup %1833 }
 0xe45   :  { %v759_v41 = vmul.f32 %v1834_v40, %v757_v39  ;;  %vm764_vm12 = vweird.f32 %v1834_v40  ;;  %v130_v39 = vld [vmem:[%s2525_s6] sm:$0x3]  ;;  %s2055_s6 = smov [#allocation11]  }
 0xe46   :  { %vm765_vm14 = vmor %vm763_vm13, %vm764_vm12  ;;  %s1709_s9 = sshll.u32 %s2055_s6, 4  ;;  %s1710_s9 = int_to_ptr.vmem [resolvable:$true] %s1709_s9 }
 0xe47   :  { %v760_v42 = vsub.f32 1.0, %v759_v41  ;;  %v2319_v41 = vperm.slane %v130_v39, 1 }
 0xe49   :  { %v761_v43 = vmul.f32 %v1834_v40, %v760_v42 }
 0xe4b   :  { %v762_v44 = vadd.f32 %v1834_v40, %v761_v43 }
 0xe4d   :  { %v766_v47 = vsel %vm765_vm14, %v1834_v40, %v762_v44  ;;  %v2317_v40 = vperm.slane %v130_v39, 0 }
 0xe4e   :  { %v771_v48 = vsel %vm768_vm15, %v770_v17, %v766_v47 }
 0xe4f   :  { %v785_v55 = vsub.f32 1.0, %v771_v48  ;;  %v791_v57 = vmul.f32 %v771_v48, %v727_v31  ;;  %v2268_v31 = vld [vmem:[#allocation10] sm:$0xff] }
 0xe50   :  { %878 = vmatpush.msra.mxu0 %v2268_v31  ;;  %995 = vmatpush.msra.mxu3 %v2268_v31 }
 0xe51   :  { %1112 = vmatpush.msrb.mxu2 %v2268_v31 }
 0xe52   :  { %1012 = vmatpush.msrb.mxu0 %v2252_v25 }
 0xe54   :  { %1013 = vmatpush.msrb.mxu0 %v2258_v28 }
 0xe56   :  { %1014 = vmatpush.msrb.mxu0 %v2262_v30 }
 0xe58   :  { %1015 = vmatpush.msrb.mxu0 %v2270_v32 }
 0xea5   :  { %v776_v26 = vpop.permute.xlu1 %775 }
 0xea6   :  { %v778_v49 = vmul.f32 %v776_v26, %v771_v48 }
 0xea8   :  { %780 = vrot.lane.b32.xlu2 %v778_v49, %s2052_s5 }
 0xf02   :  { %v781_v52 = vpop.permute.xlu2 %780 }
 0xf03   :  { %v783_v53 = vadd.f32 %v781_v52, %v309_v35 }
 0xf05   :  { %1835 = vtanh.f32 %v783_v53 }
 0xf0b   :  { %v1836_v54 = vpop.eup %1835 }
 0xf0c   :  { %787 = vrot.lane.b32.xlu0 %v1836_v54, %s2054_s3 }
 0xf7e   :  { %v788_v56 = vpop.permute.xlu0 %787 }
 0xf7f   :  { %v790_v58 = vmul.f32 %v788_v56, %v785_v55 }
 0xf81   :  { %v2235_v60 = vadd.f32 %v791_v57, %v790_v58 }
 0xf83   :  { %794 = vrot.lane.b32.xlu1 %v2235_v60, %s2054_s3 }
 0xff5   :  { %v795_v61 = vpop.permute.xlu1 %794 }
 0xff6   :  { %1747 = vmatmul.msk.f32.vlgmr.msrb.gmra.mxu3 %vm336_vm5, %v795_v61 }
 0xff7   :  { %1129 = vmatpush.msrb.mxu3 %v2252_v25 }
 0xff9   :  { %1130 = vmatpush.msrb.mxu3 %v2258_v28 }
 0xffb   :  { %1131 = vmatpush.msrb.mxu3 %v2262_v30 }
 0xffd   :  { %1132 = vmatpush.msrb.mxu3 %v2270_v32 }
0x1079   :  { %v815_v62 = vpop.f32.mrf.mxu3 }
0x107a   :  { %v838_v63 = vadd.f32 %v815_v62, %v2135_v18  ;;  %v818_v1 = vadd.f32 %v815_v62, %v2244_v0 }
0x107c   :  { %840 = vrot.lane.b32.xlu2 %v838_v63, %s2052_s5  ;;  %v1748_v2 = vmul.f32 -1.442695, %v818_v1 }
0x107e   :  { %1837 = vpow2.f32 %v1748_v2 }
0x1084   :  { %v1838_v3 = vpop.eup %1837 }
0x1085   :  { %v822_v4 = vadd.f32 1.0, %v1838_v3 }
0x1087   :  { %1839 = vrcp.f32 %v822_v4  ;;  %v834_v10 = vand.u32 2147483648, %v822_v4  ;;  %vm828_vm2 = vweird.f32 %v822_v4  ;;  %v832_v15 = vand.u32 2147483647, %v822_v4 }
0x1089   :  { %v835_v21 = vor.u32 1.1754944e-38, %v834_v10  ;;  %vm833_vm4 = vcmp.eq.f32.partialorder %v832_v15, 8.507059e+37 }
0x108d   :  { %v1840_v5 = vpop.eup %1839 }
0x108e   :  { %v824_v6 = vmul.f32 %v1840_v5, %v822_v4  ;;  %vm829_vm1 = vweird.f32 %v1840_v5 }
0x108f   :  { %vm830_vm3 = vmor %vm828_vm2, %vm829_vm1 }
0x1090   :  { %v825_v7 = vsub.f32 1.0, %v824_v6 }
0x1092   :  { %v826_v8 = vmul.f32 %v1840_v5, %v825_v7 }
0x1094   :  { %v827_v9 = vadd.f32 %v1840_v5, %v826_v8 }
0x1096   :  { %v831_v16 = vsel %vm830_vm3, %v1840_v5, %v827_v9 }
0x1097   :  { %v836_v19 = vsel %vm833_vm4, %v835_v21, %v831_v16 }
0x1098   :  { %v850_v33 = vsub.f32 1.0, %v836_v19  ;;  %v856_v35 = vmul.f32 %v836_v19, %v2235_v60 }
0x10d6   :  { %v841_v59 = vpop.permute.xlu2 %840 }
0x10d7   :  { %v843_v51 = vmul.f32 %v841_v59, %v836_v19 }
0x10d9   :  { %845 = vrot.lane.b32.xlu0 %v843_v51, %s2052_s5 }
0x114b   :  { %v846_v20 = vpop.permute.xlu0 %845 }
0x114c   :  { %v848_v22 = vadd.f32 %v846_v20, %v2244_v0 }
0x114e   :  { %1841 = vtanh.f32 %v848_v22 }
0x1154   :  { %v1842_v23 = vpop.eup %1841 }
0x1155   :  { %852 = vrot.lane.b32.xlu1 %v1842_v23, %s2054_s3 }
0x11c7   :  { %v853_v34 = vpop.permute.xlu1 %852 }
0x11c8   :  { %v855_v36 = vmul.f32 %v853_v34, %v850_v33 }
0x11ca   :  { %v2295_v37 = vadd.f32 %v856_v35, %v855_v36 }
0x11cc   :  { %859 = vrot.lane.b32.xlu2 %v2295_v37, %s2054_s3 }
0x1226   :  { %v860_v38 = vpop.permute.xlu2 %859 }
0x1227   :  { %1749 = vmatmul.msk.f32.vlgmr.msra.gmra.mxu0 %vm336_vm5, %v860_v38  ;;  %1750 = vmatmul.msk.f32.vlgmr.msra.gmra.mxu1 %vm336_vm5, %v860_v38 }
0x1228   :  { %1751 = vmatmul.msk.f32.vlgmr.msra.gmra.mxu2 %vm336_vm5, %v860_v38  ;;  %1161 = vmatpush.msra.mxu0 %v2116_v11 }
0x1229   :  { %1246 = vmatpush.msra.mxu2 %v2252_v25  ;;  %1226 = vmatpush.msra.mxu1 %v2250_v24 }
0x122a   :  { %1162 = vmatpush.msra.mxu0 %v2119_v12 }
0x122b   :  { %1247 = vmatpush.msra.mxu2 %v2258_v28  ;;  %1227 = vmatpush.msra.mxu1 %v2254_v27 }
0x122c   :  { %1163 = vmatpush.msra.mxu0 %v2122_v13 }
0x122d   :  { %1248 = vmatpush.msra.mxu2 %v2262_v30  ;;  %1228 = vmatpush.msra.mxu1 %v2260_v29 }
0x122e   :  { %1164 = vmatpush.msra.mxu0 %v2125_v14 }
0x122f   :  { %1249 = vmatpush.msra.mxu2 %v2270_v32  ;;  %1229 = vmatpush.msra.mxu1 %v2268_v31 }
0x12a4   :  { %v880_v42 = vpop.f32.mrf.mxu0  ;;  %v900_v43 = vpop.f32.mrf.mxu1 }
0x12a5   :  { %v881_v44 = vadd.f32 %v880_v42, %v2317_v40  ;;  %v901_v45 = vadd.f32 %v900_v43, %v2319_v41 }
0x12a7   :  { %v2324_v46 = vadd.f32 %v881_v44, %v2192_v50  ;;  %910 = vrot.lane.b32.xlu1 %v901_v45, %s2052_s5  ;;  %908 = vrot.lane.b32.xlu0 %v881_v44, %s2052_s5 }
0x12a9   :  { %905 = vst.msk [vmem:[#allocation11] sm:$0x3] %vm904_vm6, %v2324_v46 }
0x12ab   :  { %v932_v47 = vpop.f32.mrf.mxu2 }
0x12ac   :  { %v955_v17 = vadd.f32 %v932_v47, %v2135_v18 }
0x12ae   :  { %957 = vrot.lane.b32.xlu2 %v955_v17, %s2052_s5 }
0x1308   :  { %v958_v2 = vpop.permute.xlu2 %957 }
0x1319   :  { %v911_v26 = vpop.permute.xlu1 %910  ;;  %v909_v48 = vpop.permute.xlu0 %908 }
0x131a   :  { %v912_v49 = vsel %vm137_vm0, %v909_v48, %v911_v26 }
0x131b   :  { %v2334_v52 = vadd.f32 %v912_v49, %v2244_v0 }
0x131d   :  { %v935_v50 = vadd.f32 %v932_v47, %v2334_v52 }
0x131f   :  { %v1752_v53 = vmul.f32 -1.442695, %v935_v50 }
0x1321   :  { %1843 = vpow2.f32 %v1752_v53 }
0x1327   :  { %v1844_v54 = vpop.eup %1843 }
0x1328   :  { %v939_v55 = vadd.f32 1.0, %v1844_v54 }
0x132a   :  { %1845 = vrcp.f32 %v939_v55  ;;  %v951_v60 = vand.u32 2147483648, %v939_v55  ;;  %v949_v62 = vand.u32 2147483647, %v939_v55  ;;  %vm945_vm8 = vweird.f32 %v939_v55 }
0x132c   :  { %v952_v1 = vor.u32 1.1754944e-38, %v951_v60  ;;  %vm950_vm10 = vcmp.eq.f32.partialorder %v949_v62, 8.507059e+37  ;;  %v2392_v62 = vld [vmem:[#allocation7 + $0x10] sm:$0xff] }
0x1330   :  { %v1846_v56 = vpop.eup %1845 }
0x1331   :  { %v941_v57 = vmul.f32 %v1846_v56, %v939_v55  ;;  %vm946_vm7 = vweird.f32 %v1846_v56 }
0x1332   :  { %vm947_vm9 = vmor %vm945_vm8, %vm946_vm7 }
0x1333   :  { %v942_v58 = vsub.f32 1.0, %v941_v57 }
0x1335   :  { %v943_v61 = vmul.f32 %v1846_v56, %v942_v58 }
0x1337   :  { %v944_v63 = vadd.f32 %v1846_v56, %v943_v61  ;;  %v2387_v61 = vld [vmem:[#allocation7 + $0x18] sm:$0xff] }
0x1339   :  { %v948_v0 = vsel %vm947_vm9, %v1846_v56, %v944_v63  ;;  %v2397_v63 = vld [vmem:[#allocation7 + $0x8] sm:$0xff] }
0x133a   :  { %v953_v3 = vsel %vm950_vm10, %v952_v1, %v948_v0  ;;  %v2402_v1 = vld [vmem:[#allocation7] sm:$0xff] }
0x133b   :  { %v960_v4 = vmul.f32 %v958_v2, %v953_v3  ;;  %v967_v8 = vsub.f32 1.0, %v953_v3  ;;  %v973_v10 = vmul.f32 %v953_v3, %v2295_v37 }
0x133d   :  { %962 = vrot.lane.b32.xlu0 %v960_v4, %s2052_s5 }
0x13af   :  { %v963_v5 = vpop.permute.xlu0 %962 }
0x13b0   :  { %v965_v6 = vadd.f32 %v963_v5, %v2334_v52 }
0x13b2   :  { %1847 = vtanh.f32 %v965_v6 }
0x13b8   :  { %v1848_v7 = vpop.eup %1847 }
0x13b9   :  { %969 = vrot.lane.b32.xlu1 %v1848_v7, %s2054_s3 }
0x142b   :  { %v970_v9 = vpop.permute.xlu1 %969 }
0x142c   :  { %v972_v15 = vmul.f32 %v970_v9, %v967_v8 }
0x142e   :  { %v2341_v16 = vadd.f32 %v973_v10, %v972_v15 }
0x1430   :  { %976 = vrot.lane.b32.xlu2 %v2341_v16, %s2054_s3 }
0x148a   :  { %v977_v21 = vpop.permute.xlu2 %976 }
0x148b   :  { %1753 = vmatmul.msk.f32.vlgmr.msra.gmra.mxu3 %vm336_vm5, %v977_v21  ;;  %1754 = vmatmul.msk.f32.vlgmr.msrb.gmra.mxu0 %vm336_vm5, %v977_v21 }
0x148c   :  { %1755 = vmatmul.msk.f32.vlgmr.msrb.gmra.mxu1 %vm336_vm5, %v977_v21  ;;  %1278 = vmatpush.msra.mxu3 %v2116_v11 }
0x148d   :  { %1343 = vmatpush.msrb.mxu0 %v2250_v24  ;;  %1363 = vmatpush.msrb.mxu1 %v2252_v25 }
0x148e   :  { %1279 = vmatpush.msra.mxu3 %v2119_v12 }
0x148f   :  { %1344 = vmatpush.msrb.mxu0 %v2254_v27  ;;  %1364 = vmatpush.msrb.mxu1 %v2258_v28 }
0x1490   :  { %1280 = vmatpush.msra.mxu3 %v2122_v13 }
0x1491   :  { %1345 = vmatpush.msrb.mxu0 %v2260_v29  ;;  %1365 = vmatpush.msrb.mxu1 %v2262_v30 }
0x1492   :  { %1281 = vmatpush.msra.mxu3 %v2125_v14 }
0x1493   :  { %1346 = vmatpush.msrb.mxu0 %v2268_v31  ;;  %1366 = vmatpush.msrb.mxu1 %v2270_v32 }
0x1508   :  { %v1017_v11 = vpop.f32.mrf.mxu0 }
0x1509   :  { %v1018_v59 = vadd.f32 %v1017_v11, %v2319_v41  ;;  %v1049_v12 = vpop.f32.mrf.mxu1 }
0x150a   :  { %v1072_v19 = vadd.f32 %v1049_v12, %v2135_v18 }
0x150b   :  { %1027 = vrot.lane.b32.xlu1 %v1018_v59, %s2052_s5 }
0x150c   :  { %1074 = vrot.lane.b32.xlu2 %v1072_v19, %s2052_s5 }
0x150e   :  { %v997_v13 = vpop.f32.mrf.mxu3 }
0x150f   :  { %v998_v51 = vadd.f32 %v997_v13, %v2317_v40 }
0x1511   :  { %v2366_v20 = vadd.f32 %v998_v51, %v2324_v46  ;;  %1025 = vrot.lane.b32.xlu0 %v998_v51, %s2052_s5 }
0x1513   :  { %1022 = vst.msk [vmem:[#allocation11 + $0x2] sm:$0x3] %vm904_vm6, %v2366_v20 }
0x1566   :  { %v1075_v26 = vpop.permute.xlu2 %1074 }
0x157d   :  { %v1028_v14 = vpop.permute.xlu1 %1027 }
0x1583   :  { %v1026_v22 = vpop.permute.xlu0 %1025 }
0x1584   :  { %v1029_v23 = vsel %vm137_vm0, %v1026_v22, %v1028_v14 }
0x1585   :  { %v2373_v33 = vadd.f32 %v1029_v23, %v2334_v52 }
0x1587   :  { %v1052_v34 = vadd.f32 %v1049_v12, %v2373_v33 }
0x1589   :  { %v1756_v35 = vmul.f32 -1.442695, %v1052_v34 }
0x158b   :  { %1849 = vpow2.f32 %v1756_v35 }
0x1591   :  { %v1850_v36 = vpop.eup %1849 }
0x1592   :  { %v1056_v37 = vadd.f32 1.0, %v1850_v36 }
0x1594   :  { %1851 = vrcp.f32 %v1056_v37  ;;  %v1068_v43 = vand.u32 2147483648, %v1056_v37  ;;  %v1066_v45 = vand.u32 2147483647, %v1056_v37  ;;  %vm1062_vm12 = vweird.f32 %v1056_v37 }
0x1596   :  { %v1069_v47 = vor.u32 1.1754944e-38, %v1068_v43  ;;  %vm1067_vm14 = vcmp.eq.f32.partialorder %v1066_v45, 8.507059e+37 }
0x159a   :  { %v1852_v38 = vpop.eup %1851 }
0x159b   :  { %v1058_v39 = vmul.f32 %v1852_v38, %v1056_v37  ;;  %vm1063_vm11 = vweird.f32 %v1852_v38 }
0x159c   :  { %vm1064_vm13 = vmor %vm1062_vm12, %vm1063_vm11 }
0x159d   :  { %v1059_v42 = vsub.f32 1.0, %v1058_v39 }
0x159f   :  { %v1060_v44 = vmul.f32 %v1852_v38, %v1059_v42 }
0x15a1   :  { %v1061_v46 = vadd.f32 %v1852_v38, %v1060_v44 }
0x15a3   :  { %v1065_v17 = vsel %vm1064_vm13, %v1852_v38, %v1061_v46 }
0x15a4   :  { %v1070_v48 = vsel %vm1067_vm14, %v1069_v47, %v1065_v17 }
0x15a5   :  { %v1077_v49 = vmul.f32 %v1075_v26, %v1070_v48  ;;  %v1084_v54 = vsub.f32 1.0, %v1070_v48  ;;  %v1090_v56 = vmul.f32 %v1070_v48, %v2341_v16 }
0x15a7   :  { %1079 = vrot.lane.b32.xlu0 %v1077_v49, %s2052_s5 }
0x1619   :  { %v1080_v52 = vpop.permute.xlu0 %1079 }
0x161a   :  { %v1082_v50 = vadd.f32 %v1080_v52, %v2373_v33 }
0x161c   :  { %1853 = vtanh.f32 %v1082_v50 }
0x1622   :  { %v1854_v53 = vpop.eup %1853 }
0x1623   :  { %1086 = vrot.lane.b32.xlu1 %v1854_v53, %s2054_s3 }
0x1695   :  { %v1087_v55 = vpop.permute.xlu1 %1086 }
0x1696   :  { %v1089_v57 = vmul.f32 %v1087_v55, %v1084_v54 }
0x1698   :  { %v2380_v58 = vadd.f32 %v1090_v56, %v1089_v57 }
0x169a   :  { %1093 = vrot.lane.b32.xlu2 %v2380_v58, %s2054_s3 }
0x16f4   :  { %v1094_v60 = vpop.permute.xlu2 %1093 }
0x16f5   :  { %1757 = vmatmul.msk.f32.vlgmr.msrb.gmra.mxu2 %vm336_vm5, %v1094_v60  ;;  %1758 = vmatmul.msk.f32.vlgmr.msrb.gmra.mxu3 %vm336_vm5, %v1094_v60 }
0x16f6   :  { %1759 = vmatmul.msk.f32.vlgmr.msra.gmra.mxu0 %vm336_vm5, %v1094_v60  ;;  %1395 = vmatpush.msrb.mxu2 %v2387_v61 }
0x16f7   :  { %1460 = vmatpush.msrb.mxu3 %v2250_v24  ;;  %1480 = vmatpush.msra.mxu0 %v2252_v25 }
0x16f8   :  { %1396 = vmatpush.msrb.mxu2 %v2392_v62 }
0x16f9   :  { %1461 = vmatpush.msrb.mxu3 %v2254_v27  ;;  %1481 = vmatpush.msra.mxu0 %v2258_v28 }
0x16fa   :  { %1397 = vmatpush.msrb.mxu2 %v2397_v63 }
0x16fb   :  { %1462 = vmatpush.msrb.mxu3 %v2260_v29  ;;  %1482 = vmatpush.msra.mxu0 %v2262_v30 }
0x16fc   :  { %1398 = vmatpush.msrb.mxu2 %v2402_v1 }
0x16fd   :  { %1463 = vmatpush.msrb.mxu3 %v2268_v31  ;;  %1483 = vmatpush.msra.mxu0 %v2270_v32 }
0x1773   :  { %v1166_v0 = vpop.f32.mrf.mxu0 }
0x1774   :  { %v1189_v2 = vadd.f32 %v1166_v0, %v2135_v18 }
0x1776   :  { %1191 = vrot.lane.b32.xlu2 %v1189_v2, %s2052_s5 }
0x1778   :  { %v1114_v3 = vpop.f32.mrf.mxu2  ;;  %v1134_v4 = vpop.f32.mrf.mxu3 }
0x1779   :  { %v1115_v5 = vadd.f32 %v1114_v3, %v2317_v40  ;;  %v1135_v6 = vadd.f32 %v1134_v4, %v2319_v41 }
0x177b   :  { %v1137_v7 = vadd.f32 %v1115_v5, %v2366_v20  ;;  %1144 = vrot.lane.b32.xlu1 %v1135_v6, %s2052_s5  ;;  %1142 = vrot.lane.b32.xlu0 %v1115_v5, %s2052_s5 }
0x177d   :  { %1139 = vst.msk [vmem:[#allocation11 + $0x4] sm:$0x3] %vm904_vm6, %v1137_v7 }
0x17d0   :  { %v1192_v34 = vpop.permute.xlu2 %1191 }
0x17ed   :  { %v1145_v8 = vpop.permute.xlu1 %1144  ;;  %v1143_v9 = vpop.permute.xlu0 %1142 }
0x17ee   :  { %v1146_v10 = vsel %vm137_vm0, %v1143_v9, %v1145_v8 }
0x17ef   :  { %v2417_v15 = vadd.f32 %v1146_v10, %v2373_v33 }
0x17f1   :  { %v1169_v16 = vadd.f32 %v1166_v0, %v2417_v15 }
0x17f3   :  { %v1760_v21 = vmul.f32 -1.442695, %v1169_v16 }
0x17f5   :  { %1855 = vpow2.f32 %v1760_v21 }
0x17fb   :  { %v1856_v11 = vpop.eup %1855 }
0x17fc   :  { %v1173_v59 = vadd.f32 1.0, %v1856_v11 }
0x17fe   :  { %1857 = vrcp.f32 %v1173_v59  ;;  %v1185_v51 = vand.u32 2147483648, %v1173_v59  ;;  %v1183_v14 = vand.u32 2147483647, %v1173_v59  ;;  %vm1179_vm1 = vweird.f32 %v1173_v59 }
0x1800   :  { %v1186_v23 = vor.u32 1.1754944e-38, %v1185_v51  ;;  %vm1184_vm3 = vcmp.eq.f32.partialorder %v1183_v14, 8.507059e+37 }
0x1804   :  { %v1858_v12 = vpop.eup %1857 }
0x1805   :  { %v1175_v19 = vmul.f32 %v1858_v12, %v1173_v59  ;;  %vm1180_vm15 = vweird.f32 %v1858_v12 }
0x1806   :  { %vm1181_vm2 = vmor %vm1179_vm1, %vm1180_vm15 }
0x1807   :  { %v1176_v13 = vsub.f32 1.0, %v1175_v19 }
0x1809   :  { %v1177_v20 = vmul.f32 %v1858_v12, %v1176_v13 }
0x180b   :  { %v1178_v22 = vadd.f32 %v1858_v12, %v1177_v20 }
0x180d   :  { %v1182_v33 = vsel %vm1181_vm2, %v1858_v12, %v1178_v22 }
0x180e   :  { %v1187_v35 = vsel %vm1184_vm3, %v1186_v23, %v1182_v33 }
0x180f   :  { %v1194_v36 = vmul.f32 %v1192_v34, %v1187_v35  ;;  %v1201_v42 = vsub.f32 1.0, %v1187_v35  ;;  %v1207_v44 = vmul.f32 %v1187_v35, %v2380_v58 }
0x1811   :  { %1196 = vrot.lane.b32.xlu0 %v1194_v36, %s2052_s5 }
0x1883   :  { %v1197_v37 = vpop.permute.xlu0 %1196 }
0x1884   :  { %v1199_v38 = vadd.f32 %v1197_v37, %v2417_v15 }
0x1886   :  { %1859 = vtanh.f32 %v1199_v38 }
0x188c   :  { %v1860_v39 = vpop.eup %1859 }
0x188d   :  { %1203 = vrot.lane.b32.xlu1 %v1860_v39, %s2054_s3 }
0x18ff   :  { %v1204_v43 = vpop.permute.xlu1 %1203 }
0x1900   :  { %v1206_v45 = vmul.f32 %v1204_v43, %v1201_v42 }
0x1902   :  { %v2424_v46 = vadd.f32 %v1207_v44, %v1206_v45 }
0x1904   :  { %1210 = vrot.lane.b32.xlu2 %v2424_v46, %s2054_s3 }
0x195e   :  { %v1211_v47 = vpop.permute.xlu2 %1210 }
0x195f   :  { %1761 = vmatmul.msk.f32.vlgmr.msra.gmra.mxu1 %vm336_vm5, %v1211_v47  ;;  %1762 = vmatmul.msk.f32.vlgmr.msra.gmra.mxu2 %vm336_vm5, %v1211_v47 }
0x1960   :  { %1763 = vmatmul.msk.f32.vlgmr.msra.gmra.mxu3 %vm336_vm5, %v1211_v47  ;;  %1512 = vmatpush.msra.mxu1 %v2387_v61 }
0x1961   :  { %1577 = vmatpush.msra.mxu2 %v2250_v24  ;;  %1597 = vmatpush.msra.mxu3 %v2252_v25 }
0x1962   :  { %1513 = vmatpush.msra.mxu1 %v2392_v62 }
0x1963   :  { %1578 = vmatpush.msra.mxu2 %v2254_v27  ;;  %1598 = vmatpush.msra.mxu3 %v2258_v28 }
0x1964   :  { %1514 = vmatpush.msra.mxu1 %v2397_v63 }
0x1965   :  { %1579 = vmatpush.msra.mxu2 %v2260_v29  ;;  %1599 = vmatpush.msra.mxu3 %v2262_v30 }
0x1966   :  { %1515 = vmatpush.msra.mxu1 %v2402_v1 }
0x1967   :  { %1580 = vmatpush.msra.mxu2 %v2268_v31  ;;  %1600 = vmatpush.msra.mxu3 %v2270_v32 }
0x19dc   :  { %v1231_v17 = vpop.f32.mrf.mxu1 }
0x19dd   :  { %v1232_v25 = vadd.f32 %v1231_v17, %v2317_v40 }
0x19df   :  { %v2444_v26 = vadd.f32 %v1232_v25, %v1137_v7  ;;  %1259 = vrot.lane.b32.xlu0 %v1232_v25, %s2052_s5 }
0x19e1   :  { %1256 = vst.msk [vmem:[#allocation11 + $0x6] sm:$0x3] %vm904_vm6, %v2444_v26 }
0x19e2   :  { %v1251_v28 = vpop.f32.mrf.mxu2 }
0x19e3   :  { %v1252_v48 = vadd.f32 %v1251_v28, %v2319_v41  ;;  %v1283_v30 = vpop.f32.mrf.mxu3 }
0x19e4   :  { %v1306_v49 = vadd.f32 %v1283_v30, %v2135_v18 }
0x19e5   :  { %1261 = vrot.lane.b32.xlu1 %v1252_v48, %s2052_s5 }
0x19e6   :  { %1308 = vrot.lane.b32.xlu2 %v1306_v49, %s2052_s5 }
0x1a40   :  { %v1309_v8 = vpop.permute.xlu2 %1308 }
0x1a51   :  { %v1260_v32 = vpop.permute.xlu0 %1259 }
0x1a57   :  { %v1262_v52 = vpop.permute.xlu1 %1261 }
0x1a58   :  { %v1263_v50 = vsel %vm137_vm0, %v1260_v32, %v1262_v52 }
0x1a59   :  { %v1265_v53 = vadd.f32 %v1263_v50, %v2417_v15 }
0x1a5b   :  { %v1286_v54 = vadd.f32 %v1283_v30, %v1265_v53 }
0x1a5d   :  { %v1764_v55 = vmul.f32 -1.442695, %v1286_v54 }
0x1a5f   :  { %1861 = vpow2.f32 %v1764_v55 }
0x1a65   :  { %v1862_v56 = vpop.eup %1861 }
0x1a66   :  { %v1290_v57 = vadd.f32 1.0, %v1862_v56 }
0x1a68   :  { %1863 = vrcp.f32 %v1290_v57  ;;  %v1302_v2 = vand.u32 2147483648, %v1290_v57  ;;  %v1300_v4 = vand.u32 2147483647, %v1290_v57  ;;  %vm1296_vm7 = vweird.f32 %v1290_v57 }
0x1a6a   :  { %v1303_v6 = vor.u32 1.1754944e-38, %v1302_v2  ;;  %vm1301_vm9 = vcmp.eq.f32.partialorder %v1300_v4, 8.507059e+37 }
0x1a6e   :  { %v1864_v58 = vpop.eup %1863 }
0x1a6f   :  { %v1292_v60 = vmul.f32 %v1864_v58, %v1290_v57  ;;  %vm1297_vm4 = vweird.f32 %v1864_v58 }
0x1a70   :  { %vm1298_vm8 = vmor %vm1296_vm7, %vm1297_vm4 }
0x1a71   :  { %v1293_v0 = vsub.f32 1.0, %v1292_v60 }
0x1a73   :  { %v1294_v3 = vmul.f32 %v1864_v58, %v1293_v0 }
0x1a75   :  { %v1295_v5 = vadd.f32 %v1864_v58, %v1294_v3 }
0x1a77   :  { %v1299_v7 = vsel %vm1298_vm8, %v1864_v58, %v1295_v5 }
0x1a78   :  { %v1304_v9 = vsel %vm1301_vm9, %v1303_v6, %v1299_v7 }
0x1a79   :  { %v1311_v10 = vmul.f32 %v1309_v8, %v1304_v9  ;;  %v1318_v11 = vsub.f32 1.0, %v1304_v9  ;;  %v1324_v12 = vmul.f32 %v1304_v9, %v2424_v46 }
0x1a7b   :  { %1313 = vrot.lane.b32.xlu0 %v1311_v10, %s2052_s5 }
0x1aed   :  { %v1314_v15 = vpop.permute.xlu0 %1313 }
0x1aee   :  { %v1316_v16 = vadd.f32 %v1314_v15, %v1265_v53 }
0x1af0   :  { %1865 = vtanh.f32 %v1316_v16 }
0x1af6   :  { %v1866_v21 = vpop.eup %1865 }
0x1af7   :  { %1320 = vrot.lane.b32.xlu1 %v1866_v21, %s2054_s3 }
0x1b69   :  { %v1321_v59 = vpop.permute.xlu1 %1320 }
0x1b6a   :  { %v1323_v19 = vmul.f32 %v1321_v59, %v1318_v11 }
0x1b6c   :  { %v1325_v13 = vadd.f32 %v1324_v12, %v1323_v19 }
0x1b6e   :  { %1327 = vrot.lane.b32.xlu2 %v1325_v13, %s2054_s3 }
0x1bc8   :  { %v1328_v51 = vpop.permute.xlu2 %1327 }
0x1bc9   :  { %1765 = vmatmul.msk.f32.vlgmr.msrb.gmra.mxu0 %vm336_vm5, %v1328_v51  ;;  %1766 = vmatmul.msk.f32.vlgmr.msrb.gmra.mxu1 %vm336_vm5, %v1328_v51 }
0x1bca   :  { %1767 = vmatmul.msk.f32.vlgmr.msrb.gmra.mxu2 %vm336_vm5, %v1328_v51  ;;  %1629 = vmatpush.msrb.mxu0 %v2387_v61 }
0x1bcb   :  { %1694 = vmatpush.msrb.mxu1 %v2250_v24 }
0x1bcc   :  { %1630 = vmatpush.msrb.mxu0 %v2392_v62 }
0x1bcd   :  { %1695 = vmatpush.msrb.mxu1 %v2254_v27 }
0x1bce   :  { %1631 = vmatpush.msrb.mxu0 %v2397_v63 }
0x1bcf   :  { %1696 = vmatpush.msrb.mxu1 %v2260_v29 }
0x1bd0   :  { %1632 = vmatpush.msrb.mxu0 %v2402_v1 }
0x1bd1   :  { %1697 = vmatpush.msrb.mxu1 %v2268_v31 }
0x1c46   :  { %v1348_v20 = vpop.f32.mrf.mxu0  ;;  %v1368_v14 = vpop.f32.mrf.mxu1 }
0x1c47   :  { %v1349_v22 = vadd.f32 %v1348_v20, %v2317_v40  ;;  %v1369_v61 = vadd.f32 %v1368_v14, %v2319_v41 }
0x1c49   :  { %v1371_v24 = vadd.f32 %v1349_v22, %v2444_v26  ;;  %1378 = vrot.lane.b32.xlu1 %v1369_v61, %s2052_s5  ;;  %1376 = vrot.lane.b32.xlu0 %v1349_v22, %s2052_s5 }
0x1c4b   :  { %1373 = vst.msk [vmem:[#allocation11 + $0x8] sm:$0x3] %vm904_vm6, %v1371_v24 }
0x1c4d   :  { %v1400_v27 = vpop.f32.mrf.mxu2 }
0x1c4e   :  { %v1423_v29 = vadd.f32 %v1400_v27, %v2135_v18 }
0x1c50   :  { %1425 = vrot.lane.b32.xlu2 %v1423_v29, %s2052_s5 }
0x1caa   :  { %v1426_v47 = vpop.permute.xlu2 %1425 }
0x1cbb   :  { %v1379_v31 = vpop.permute.xlu1 %1378  ;;  %v1377_v62 = vpop.permute.xlu0 %1376 }
0x1cbc   :  { %v1380_v63 = vsel %vm137_vm0, %v1377_v62, %v1379_v31 }
0x1cbd   :  { %v1382_v1 = vadd.f32 %v1380_v63, %v1265_v53 }
0x1cbf   :  { %v1403_v23 = vadd.f32 %v1400_v27, %v1382_v1 }
0x1cc1   :  { %v1768_v33 = vmul.f32 -1.442695, %v1403_v23 }
0x1cc3   :  { %1867 = vpow2.f32 %v1768_v33 }
0x1cc9   :  { %v1868_v34 = vpop.eup %1867 }
0x1cca   :  { %v1407_v35 = vadd.f32 1.0, %v1868_v34 }
0x1ccc   :  { %1869 = vrcp.f32 %v1407_v35  ;;  %v1419_v39 = vand.u32 2147483648, %v1407_v35  ;;  %v1417_v43 = vand.u32 2147483647, %v1407_v35  ;;  %vm1413_vm11 = vweird.f32 %v1407_v35 }
0x1cce   :  { %v1420_v45 = vor.u32 1.1754944e-38, %v1419_v39  ;;  %vm1418_vm13 = vcmp.eq.f32.partialorder %v1417_v43, 8.507059e+37 }
0x1cd2   :  { %v1870_v36 = vpop.eup %1869 }
0x1cd3   :  { %v1409_v37 = vmul.f32 %v1870_v36, %v1407_v35  ;;  %vm1414_vm10 = vweird.f32 %v1870_v36 }
0x1cd4   :  { %vm1415_vm12 = vmor %vm1413_vm11, %vm1414_vm10 }
0x1cd5   :  { %v1410_v38 = vsub.f32 1.0, %v1409_v37 }
0x1cd7   :  { %v1411_v42 = vmul.f32 %v1870_v36, %v1410_v38 }
0x1cd9   :  { %v1412_v44 = vadd.f32 %v1870_v36, %v1411_v42 }
0x1cdb   :  { %v1416_v46 = vsel %vm1415_vm12, %v1870_v36, %v1412_v44 }
0x1cdc   :  { %v1421_v17 = vsel %vm1418_vm13, %v1420_v45, %v1416_v46 }
0x1cdd   :  { %v1428_v25 = vmul.f32 %v1426_v47, %v1421_v17  ;;  %v1435_v30 = vsub.f32 1.0, %v1421_v17  ;;  %v1441_v32 = vmul.f32 %v1421_v17, %v1325_v13 }
0x1cdf   :  { %1430 = vrot.lane.b32.xlu0 %v1428_v25, %s2052_s5 }
0x1d51   :  { %v1431_v26 = vpop.permute.xlu0 %1430 }
0x1d52   :  { %v1433_v28 = vadd.f32 %v1431_v26, %v1382_v1 }
0x1d54   :  { %1871 = vtanh.f32 %v1433_v28 }
0x1d5a   :  { %v1872_v48 = vpop.eup %1871 }
0x1d5b   :  { %1437 = vrot.lane.b32.xlu1 %v1872_v48, %s2054_s3 }
0x1dcd   :  { %v1438_v49 = vpop.permute.xlu1 %1437 }
0x1dce   :  { %v1440_v52 = vmul.f32 %v1438_v49, %v1435_v30 }
0x1dd0   :  { %v1442_v50 = vadd.f32 %v1441_v32, %v1440_v52 }
0x1dd2   :  { %1444 = vrot.lane.b32.xlu2 %v1442_v50, %s2054_s3 }
0x1e2c   :  { %v1445_v53 = vpop.permute.xlu2 %1444 }
0x1e2d   :  { %1769 = vmatmul.msk.f32.vlgmr.msrb.gmra.mxu3 %vm336_vm5, %v1445_v53  ;;  %1770 = vmatmul.msk.f32.vlgmr.msra.gmra.mxu0 %vm336_vm5, %v1445_v53 }
0x1e2e   :  { %1771 = vmatmul.msk.f32.vlgmr.msra.gmra.mxu1 %vm336_vm5, %v1445_v53 }
0x1eaa   :  { %v1485_v54 = vpop.f32.mrf.mxu0 }
0x1eab   :  { %v1486_v55 = vadd.f32 %v1485_v54, %v2319_v41  ;;  %v1517_v56 = vpop.f32.mrf.mxu1 }
0x1eac   :  { %v1540_v57 = vadd.f32 %v1517_v56, %v2135_v18 }
0x1ead   :  { %1495 = vrot.lane.b32.xlu1 %v1486_v55, %s2052_s5 }
0x1eae   :  { %1542 = vrot.lane.b32.xlu2 %v1540_v57, %s2052_s5 }
0x1eb0   :  { %v1465_v58 = vpop.f32.mrf.mxu3 }
0x1eb1   :  { %v1466_v60 = vadd.f32 %v1465_v58, %v2317_v40 }
0x1eb3   :  { %v1488_v0 = vadd.f32 %v1466_v60, %v1371_v24  ;;  %1493 = vrot.lane.b32.xlu0 %v1466_v60, %s2052_s5 }
0x1eb5   :  { %1490 = vst.msk [vmem:[#allocation11 + $0xa] sm:$0x3] %vm904_vm6, %v1488_v0 }
0x1f08   :  { %v1543_v51 = vpop.permute.xlu2 %1542 }
0x1f1f   :  { %v1496_v2 = vpop.permute.xlu1 %1495 }
0x1f25   :  { %v1494_v3 = vpop.permute.xlu0 %1493 }
0x1f26   :  { %v1497_v4 = vsel %vm137_vm0, %v1494_v3, %v1496_v2 }
0x1f27   :  { %v1499_v5 = vadd.f32 %v1497_v4, %v1382_v1 }
0x1f29   :  { %v1520_v6 = vadd.f32 %v1517_v56, %v1499_v5 }
0x1f2b   :  { %v1772_v7 = vmul.f32 -1.442695, %v1520_v6 }
0x1f2d   :  { %1873 = vpow2.f32 %v1772_v7 }
0x1f33   :  { %v1874_v8 = vpop.eup %1873 }
0x1f34   :  { %v1524_v9 = vadd.f32 1.0, %v1874_v8 }
0x1f36   :  { %1875 = vrcp.f32 %v1524_v9  ;;  %v1536_v21 = vand.u32 2147483648, %v1524_v9  ;;  %v1534_v59 = vand.u32 2147483647, %v1524_v9  ;;  %vm1530_vm15 = vweird.f32 %v1524_v9 }
0x1f38   :  { %v1537_v19 = vor.u32 1.1754944e-38, %v1536_v21  ;;  %vm1535_vm2 = vcmp.eq.f32.partialorder %v1534_v59, 8.507059e+37 }
0x1f3c   :  { %v1876_v10 = vpop.eup %1875 }
0x1f3d   :  { %v1526_v15 = vmul.f32 %v1876_v10, %v1524_v9  ;;  %vm1531_vm14 = vweird.f32 %v1876_v10 }
0x1f3e   :  { %vm1532_vm1 = vmor %vm1530_vm15, %vm1531_vm14 }
0x1f3f   :  { %v1527_v16 = vsub.f32 1.0, %v1526_v15 }
0x1f41   :  { %v1528_v11 = vmul.f32 %v1876_v10, %v1527_v16 }
0x1f43   :  { %v1529_v12 = vadd.f32 %v1876_v10, %v1528_v11 }
0x1f45   :  { %v1533_v13 = vsel %vm1532_vm1, %v1876_v10, %v1529_v12 }
0x1f46   :  { %v1538_v20 = vsel %vm1535_vm2, %v1537_v19, %v1533_v13 }
0x1f47   :  { %v1545_v14 = vmul.f32 %v1543_v51, %v1538_v20  ;;  %v1552_v27 = vsub.f32 1.0, %v1538_v20  ;;  %v1558_v31 = vmul.f32 %v1538_v20, %v1442_v50 }
0x1f49   :  { %1547 = vrot.lane.b32.xlu0 %v1545_v14, %s2052_s5 }
0x1fbb   :  { %v1548_v22 = vpop.permute.xlu0 %1547 }
0x1fbc   :  { %v1550_v61 = vadd.f32 %v1548_v22, %v1499_v5 }
0x1fbe   :  { %1877 = vtanh.f32 %v1550_v61 }
0x1fc4   :  { %v1878_v24 = vpop.eup %1877 }
0x1fc5   :  { %1554 = vrot.lane.b32.xlu1 %v1878_v24, %s2054_s3 }
0x2037   :  { %v1555_v29 = vpop.permute.xlu1 %1554 }
0x2038   :  { %v1557_v62 = vmul.f32 %v1555_v29, %v1552_v27 }
0x203a   :  { %v1559_v63 = vadd.f32 %v1558_v31, %v1557_v62 }
0x203c   :  { %1561 = vrot.lane.b32.xlu2 %v1559_v63, %s2054_s3 }
0x2096   :  { %v1562_v1 = vpop.permute.xlu2 %1561 }
0x2097   :  { %1773 = vmatmul.msk.f32.vlgmr.msra.gmra.mxu2 %vm336_vm5, %v1562_v1  ;;  %1774 = vmatmul.msk.f32.vlgmr.msra.gmra.mxu3 %vm336_vm5, %v1562_v1 }
0x2098   :  { %1775 = vmatmul.msk.f32.vlgmr.msrb.gmra.mxu0 %vm336_vm5, %v1562_v1 }
0x2115   :  { %v1634_v23 = vpop.f32.mrf.mxu0 }
0x2116   :  { %v1657_v33 = vadd.f32 %v1634_v23, %v2135_v18 }
0x2118   :  { %1659 = vrot.lane.b32.xlu2 %v1657_v33, %s2052_s5 }
0x211a   :  { %v1582_v34 = vpop.f32.mrf.mxu2  ;;  %v1602_v35 = vpop.f32.mrf.mxu3 }
0x211b   :  { %v1583_v36 = vadd.f32 %v1582_v34, %v2317_v40  ;;  %v1603_v37 = vadd.f32 %v1602_v35, %v2319_v41 }
0x211d   :  { %v1605_v38 = vadd.f32 %v1583_v36, %v1488_v0  ;;  %1612 = vrot.lane.b32.xlu1 %v1603_v37, %s2052_s5  ;;  %1610 = vrot.lane.b32.xlu0 %v1583_v36, %s2052_s5 }
0x211f   :  { %1607 = vst.msk [vmem:[#allocation11 + $0xc] sm:$0x3] %vm904_vm6, %v1605_v38 }
0x2172   :  { %v1660_v52 = vpop.permute.xlu2 %1659 }
0x218f   :  { %v1613_v39 = vpop.permute.xlu1 %1612  ;;  %v1611_v42 = vpop.permute.xlu0 %1610 }
0x2190   :  { %v1614_v43 = vsel %vm137_vm0, %v1611_v42, %v1613_v39 }
0x2191   :  { %v1616_v18 = vadd.f32 %v1614_v43, %v1499_v5 }
0x2193   :  { %v1637_v44 = vadd.f32 %v1634_v23, %v1616_v18 }
0x2195   :  { %v1776_v45 = vmul.f32 -1.442695, %v1637_v44 }
0x2197   :  { %1879 = vpow2.f32 %v1776_v45 }
0x219d   :  { %v1880_v46 = vpop.eup %1879 }
0x219e   :  { %v1641_v47 = vadd.f32 1.0, %v1880_v46 }
0x21a0   :  { %1881 = vrcp.f32 %v1641_v47  ;;  %v1653_v26 = vand.u32 2147483648, %v1641_v47  ;;  %v1651_v48 = vand.u32 2147483647, %v1641_v47  ;;  %vm1647_vm4 = vweird.f32 %v1641_v47 }
0x21a2   :  { %v1654_v49 = vor.u32 1.1754944e-38, %v1653_v26  ;;  %vm1652_vm0 = vcmp.eq.f32.partialorder %v1651_v48, 8.507059e+37 }
0x21a6   :  { %v1882_v17 = vpop.eup %1881 }
0x21a7   :  { %v1643_v41 = vmul.f32 %v1882_v17, %v1641_v47  ;;  %vm1648_vm3 = vweird.f32 %v1882_v17 }
0x21a8   :  { %vm1649_vm7 = vmor %vm1647_vm4, %vm1648_vm3 }
0x21a9   :  { %v1644_v25 = vsub.f32 1.0, %v1643_v41 }
0x21ab   :  { %v1645_v28 = vmul.f32 %v1882_v17, %v1644_v25 }
0x21ad   :  { %v1646_v30 = vadd.f32 %v1882_v17, %v1645_v28 }
0x21af   :  { %v1650_v32 = vsel %vm1649_vm7, %v1882_v17, %v1646_v30 }
0x21b0   :  { %v1655_v50 = vsel %vm1652_vm0, %v1654_v49, %v1650_v32 }
0x21b1   :  { %v1662_v53 = vmul.f32 %v1660_v52, %v1655_v50  ;;  %v1669_v57 = vsub.f32 1.0, %v1655_v50  ;;  %v1675_v60 = vmul.f32 %v1655_v50, %v1559_v63 }
0x21b3   :  { %1664 = vrot.lane.b32.xlu0 %v1662_v53, %s2052_s5 }
0x2225   :  { %v1665_v54 = vpop.permute.xlu0 %1664 }
0x2226   :  { %v1667_v55 = vadd.f32 %v1665_v54, %v1616_v18 }
0x2228   :  { %1883 = vtanh.f32 %v1667_v55 }
0x222e   :  { %v1884_v56 = vpop.eup %1883 }
0x222f   :  { %1671 = vrot.lane.b32.xlu1 %v1884_v56, %s2054_s3 }
0x22a1   :  { %v1672_v58 = vpop.permute.xlu1 %1671 }
0x22a2   :  { %v1674_v0 = vmul.f32 %v1672_v58, %v1669_v57 }
0x22a4   :  { %v1676_v2 = vadd.f32 %v1675_v60, %v1674_v0 }
0x22a6   :  { %1678 = vrot.lane.b32.xlu2 %v1676_v2, %s2054_s3 }
0x2300   :  { %v1679_v3 = vpop.permute.xlu2 %1678 }
0x2301   :  { %1777 = vmatmul.msk.f32.vlgmr.msrb.gmra.mxu1 %vm336_vm5, %v1679_v3 }
0x237e   :  { %v1699_v4 = vpop.f32.mrf.mxu1 }
0x237f   :  { %v1700_v5 = vadd.f32 %v1699_v4, %v2317_v40 }
0x2381   :  { %v1702_v6 = vadd.f32 %v1700_v5, %v1605_v38 }
0x2383   :  { %1704 = vst.msk [vmem:[#allocation11 + $0xe] sm:$0x3] %vm904_vm6, %v1702_v6 }
0x2384   :  { %1717 = dma.vmem_to_hbm [thread:$0]  %s1710_s9, 256, %s1712_s12, [#allocation4], %s2046_s19, %s2046_s19, %s2047_s20  }
0x2385   :  { %2039 = dma.done.wait [#allocation4], 256  }
0x2386   :  { %2040 = vsyncadd [#allocation4], 4294967040 }
0x2387   :  { %1722 = vsyncpa [#allocation3], 1 }
0x2388   :  { %1723 = vsyncpa [#allocation6], 1 }
0x2389   :  { %1724 = vsyncpa [#allocation9], 1 }
0x238a   :  { %1725 = vsyncpa [#allocation4], 1 }

</bundles_post_ra>
